<compile_context>
chip_gen: v6e
topology: v6e:2x2x1
jax: 0.10.0
libtpu: 0.0.40
codegen_flags: <defaults>
</compile_context>

<pallas_src>
import jax
import jax.numpy as jnp
from jax import lax
from jax.experimental import pallas as pl
from jax.experimental.pallas import tpu as pltpu

H = W = 28                 # image size
HP = WP = 30               # zero-padded plane
DPAD = HP * WP             # 900  : flattened padded plane
MARGIN = WP + 1            # 31   : max |flat tap offset| for a 3x3 kernel
WORK = DPAD + 2 * MARGIN   # 962  : conv1 / relu1 working width
XOFF = 2 * MARGIN          # 62   : offset of the 900-domain inside the input row
XIN = WORK + 2 * MARGIN    # 1024 : padded flat input width (8 lane tiles)
C1 = 8                     # conv1 / conv2 channels
K = 3                      # kernel size
NUM_CLASSES = 10
FLAT = C1 * H * W          # 6272


def residual_fused_kernel(x_ref, mask_ref, w1_ref, b1_ref, w2_ref, b2_ref,
                          wl_ref, bl_ref, o_ref, r1p_ref):
    # x_ref:   (1, 1, 1024) flattened zero-padded input row (900-domain @ lane 62)
    # mask_ref:(1, 962)     1.0 on the 28x28 interior of the padded plane, else 0
    # w1_ref:  (8, 9)       conv1 weights [cout, ky*3+kx]
    # b1_ref:  (8, 1)
    # w2_ref:  (9, 8, 8)    conv2 weights [ky*3+kx, cout, cin]
    # b2_ref:  (8, 1)
    # wl_ref:  (8, 10, 900) classifier weight embedded on the padded plane
    # bl_ref:  (1, 10)
    # o_ref:   (1, 1, 10)   logits for this sample
    # r1p_ref: (8, 962)     VMEM scratch for padded relu1
    x = x_ref[0]                                   # (1, 1024)
    w1 = w1_ref[...]                               # (8, 9)

    # ---- conv1 + b1 over the 962-wide flat working domain (9 VPU taps) ----
    acc1 = jnp.zeros((C1, WORK), jnp.float32)
    for k in range(K * K):
        dy, dx = divmod(k, K)
        off = MARGIN + (dy - 1) * WP + (dx - 1)    # static, in [0, 62]
        acc1 = acc1 + x[:, off:off + WORK] * w1[:, k:k + 1]
    acc1 = acc1 + b1_ref[...]                      # (8, 962), lane-dense (8 vregs)

    # relu1, zeroed outside the 28x28 interior == zero padding seen by conv2
    r1p_ref[...] = jnp.maximum(acc1, 0.0) * mask_ref[...]

    # ---- conv2 + b2 : nine (8,8)@(8,900) MXU matmuls over shifted windows ----
    acc2 = jnp.zeros((C1, DPAD), jnp.float32)
    for k in range(K * K):
        dy, dx = divmod(k, K)
        off = MARGIN + (dy - 1) * WP + (dx - 1)
        acc2 = acc2 + jnp.dot(w2_ref[k], r1p_ref[:, off:off + DPAD],
                              preferred_element_type=jnp.float32)
    acc2 = acc2 + b2_ref[...]

    # residual: relu(conv2) + pre-relu conv1 output (central 900 lanes)
    final = jnp.maximum(acc2, 0.0) + acc1[:, MARGIN:MARGIN + DPAD]   # (8, 900)

    # ---- fused classifier: per-channel (1,900) x (10,900)^T MXU dots ----
    # (ring / padding lanes of `final` are garbage but the embedded weight is
    #  exactly zero there, so they contribute nothing.)
    logits = bl_ref[...]                           # (1, 10)
    for c in range(C1):
        logits = logits + lax.dot_general(
            final[c:c + 1, :], wl_ref[c],
            dimension_numbers=(((1,), (1,)), ((), ())),
            preferred_element_type=jnp.float32)
    o_ref[0] = logits


def residual_net_forward(x_nchw, params):
    W1, b1, W2, b2, Wl, bl = params                # PyTorch-convention shapes
    B = x_nchw.shape[0]
    f32 = jnp.float32

    # --- parameter re-layout (plain-JAX glue) ---
    w1k = W1[:, 0].reshape(C1, K * K).astype(f32)                         # (8, 9)
    w2k = jnp.transpose(W2, (2, 3, 0, 1)).reshape(K * K, C1, C1).astype(f32)  # (9,8,8)
    # classifier weight: (10, 6272) -> [n,c,y,x] -> embed on padded 30x30 plane,
    # flatten space, channel-major, contraction dim (900) on lanes.
    wl_emb = jnp.transpose(
        jnp.pad(Wl.reshape(NUM_CLASSES, C1, H, W).astype(f32),
                ((0, 0), (0, 0), (1, 1), (1, 1))).reshape(NUM_CLASSES, C1, DPAD),
        (1, 0, 2))                                                        # (8, 10, 900)

    # --- input: zero-pad by 1, flatten the 30x30 plane, embed at lane offset 62 ---
    xp = jnp.pad(x_nchw[:, 0].astype(f32), ((0, 0), (1, 1), (1, 1)))      # (B, 30, 30)
    xflat = jnp.pad(xp.reshape(B, DPAD),
                    ((0, 0), (XOFF, XIN - XOFF - DPAD))).reshape(B, 1, XIN)

    # --- interior mask on the 962-wide working domain (grid-invariant) ---
    m = jnp.zeros((HP, WP), f32).at[1:H + 1, 1:W + 1].set(1.0)
    mask = jnp.pad(m.reshape(1, DPAD), ((0, 0), (MARGIN, MARGIN)))        # (1, 962)

    out = pl.pallas_call(
        residual_fused_kernel,
        out_shape=jax.ShapeDtypeStruct((B, 1, NUM_CLASSES), f32),
        grid_spec=pltpu.PrefetchScalarGridSpec(
            num_scalar_prefetch=0,
            grid=(B,),
            in_specs=[
                pl.BlockSpec((1, 1, XIN), lambda b: (b, 0, 0)),
                pl.BlockSpec((1, WORK), lambda b: (0, 0)),
                pl.BlockSpec((C1, K * K), lambda b: (0, 0)),
                pl.BlockSpec((C1, 1), lambda b: (0, 0)),
                pl.BlockSpec((K * K, C1, C1), lambda b: (0, 0, 0)),
                pl.BlockSpec((C1, 1), lambda b: (0, 0)),
                pl.BlockSpec((C1, NUM_CLASSES, DPAD), lambda b: (0, 0, 0)),
                pl.BlockSpec((1, NUM_CLASSES), lambda b: (0, 0)),
            ],
            out_specs=pl.BlockSpec((1, 1, NUM_CLASSES), lambda b: (b, 0, 0)),
            scratch_shapes=[pltpu.VMEM((C1, WORK), f32)],
        ),
        compiler_params=pltpu.CompilerParams(
            dimension_semantics=("parallel",)),
    )(xflat, mask, w1k, b1.reshape(C1, 1).astype(f32), w2k,
      b2.reshape(C1, 1).astype(f32), wl_emb,
      bl.reshape(1, NUM_CLASSES).astype(f32))

    return out.reshape(B, NUM_CLASSES)


def reference_forward(x, params):
    W1, b1, W2, b2, Wl, bl = params
    dn = ('NCHW', 'OIHW', 'NCHW')
    xout = lax.conv_general_dilated(x, W1, (1, 1), ((1, 1), (1, 1)),
                                    dimension_numbers=dn) + b1[None, :, None, None]
    out = jnp.maximum(xout, 0.0)
    out = lax.conv_general_dilated(out, W2, (1, 1), ((1, 1), (1, 1)),
                                   dimension_numbers=dn) + b2[None, :, None, None]
    out = jnp.maximum(out, 0.0) + xout
    flat = out.reshape(out.shape[0], -1)
    return flat @ Wl.T + bl


if __name__ == "__main__":
    key = jax.random.PRNGKey(0)
    ks = jax.random.split(key, 7)
    B = 2
    x = jax.random.normal(ks[0], (B, 1, H, W), jnp.float32)
    # deterministic synthetic parameters (shapes from Residual_net.__init__)
    W1 = 0.2 * jax.random.normal(ks[1], (C1, 1, K, K), jnp.float32)
    b1 = 0.1 * jax.random.normal(ks[2], (C1,), jnp.float32)
    W2 = 0.1 * jax.random.normal(ks[3], (C1, C1, K, K), jnp.float32)
    b2 = 0.1 * jax.random.normal(ks[4], (C1,), jnp.float32)
    Wl = 0.05 * jax.random.normal(ks[5], (NUM_CLASSES, FLAT), jnp.float32)
    bl = 0.1 * jax.random.normal(ks[6], (NUM_CLASSES,), jnp.float32)
    params = (W1, b1, W2, b2, Wl, bl)

    out = residual_net_forward(x, params)
    out = jax.block_until_ready(out)

    ref = reference_forward(x, params)
    assert out.shape == (B, NUM_CLASSES)
    assert jnp.allclose(out, ref, rtol=1e-3, atol=1e-2), (out, ref)
    print("KERNEL_OK")
</pallas_src>

<mosaic_0001>
module attributes {stable_mosaic.version = 11 : i64} {
  func.func @residual_fused_kernel(%arg0: i32, %arg1: memref<1x1x1024xf32, #tpu.memory_space<vmem>>, %arg2: memref<1x962xf32, #tpu.memory_space<vmem>>, %arg3: memref<8x9xf32, #tpu.memory_space<vmem>>, %arg4: memref<8x1xf32, #tpu.memory_space<vmem>>, %arg5: memref<9x8x8xf32, #tpu.memory_space<vmem>>, %arg6: memref<8x1xf32, #tpu.memory_space<vmem>>, %arg7: memref<8x10x900xf32, #tpu.memory_space<vmem>>, %arg8: memref<1x10xf32, #tpu.memory_space<vmem>>, %arg9: memref<1x1x10xf32, #tpu.memory_space<vmem>>, %arg10: memref<8x962xf32, #tpu.memory_space<vmem>>) attributes {dimension_semantics = [#tpu.dimension_semantics<parallel>], iteration_bounds = array<i64: 2>, scalar_prefetch = 0 : i64, scratch_operands = 1 : i64, tpu.core_type = #tpu.core_type<tc>, window_params = [{transform_indices = @transform_0, window_bounds = array<i64: 1, 1, 1024>}, {pipeline_mode = #tpu.pipeline_mode<synchronous>, transform_indices = @transform_1, window_bounds = array<i64: 1, 962>}, {pipeline_mode = #tpu.pipeline_mode<synchronous>, transform_indices = @transform_2, window_bounds = array<i64: 8, 9>}, {pipeline_mode = #tpu.pipeline_mode<synchronous>, transform_indices = @transform_3, window_bounds = array<i64: 8, 1>}, {pipeline_mode = #tpu.pipeline_mode<synchronous>, transform_indices = @transform_4, window_bounds = array<i64: 9, 8, 8>}, {pipeline_mode = #tpu.pipeline_mode<synchronous>, transform_indices = @transform_5, window_bounds = array<i64: 8, 1>}, {pipeline_mode = #tpu.pipeline_mode<synchronous>, transform_indices = @transform_6, window_bounds = array<i64: 8, 10, 900>}, {pipeline_mode = #tpu.pipeline_mode<synchronous>, transform_indices = @transform_7, window_bounds = array<i64: 1, 10>}, {transform_indices = @transform_8, window_bounds = array<i64: 1, 1, 10>}]} {
    %c0 = arith.constant 0 : index
    %c0_0 = arith.constant 0 : index
    %c0_1 = arith.constant 0 : index
    %0 = vector.load %arg1[%c0, %c0_0, %c0_1] : memref<1x1x1024xf32, #tpu.memory_space<vmem>>, vector<1x1x1024xf32>
    %1 = vector.shape_cast %0 : vector<1x1x1024xf32> to vector<1x1024xf32>
    %c0_2 = arith.constant 0 : index
    %c0_3 = arith.constant 0 : index
    %2 = vector.load %arg3[%c0_2, %c0_3] : memref<8x9xf32, #tpu.memory_space<vmem>>, vector<8x9xf32>
    %cst = arith.constant 0.000000e+00 : f32
    %3 = vector.broadcast %cst : f32 to vector<8x962xf32>
    %4 = vector.extract_strided_slice %1 {offsets = [0, 0], sizes = [1, 962], strides = [1, 1]} : vector<1x1024xf32> to vector<1x962xf32>
    %5 = vector.extract_strided_slice %2 {offsets = [0, 0], sizes = [8, 1], strides = [1, 1]} : vector<8x9xf32> to vector<8x1xf32>
    %6 = vector.broadcast %4 : vector<1x962xf32> to vector<8x962xf32>
    %7 = vector.broadcast %5 : vector<8x1xf32> to vector<8x962xf32>
    %8 = arith.mulf %6, %7 : vector<8x962xf32>
    %9 = arith.addf %3, %8 : vector<8x962xf32>
    %10 = vector.extract_strided_slice %1 {offsets = [0, 1], sizes = [1, 962], strides = [1, 1]} : vector<1x1024xf32> to vector<1x962xf32>
    %11 = vector.extract_strided_slice %2 {offsets = [0, 1], sizes = [8, 1], strides = [1, 1]} : vector<8x9xf32> to vector<8x1xf32>
    %12 = vector.broadcast %10 : vector<1x962xf32> to vector<8x962xf32>
    %13 = vector.broadcast %11 : vector<8x1xf32> to vector<8x962xf32>
    %14 = arith.mulf %12, %13 : vector<8x962xf32>
    %15 = arith.addf %9, %14 : vector<8x962xf32>
    %16 = vector.extract_strided_slice %1 {offsets = [0, 2], sizes = [1, 962], strides = [1, 1]} : vector<1x1024xf32> to vector<1x962xf32>
    %17 = vector.extract_strided_slice %2 {offsets = [0, 2], sizes = [8, 1], strides = [1, 1]} : vector<8x9xf32> to vector<8x1xf32>
    %18 = vector.broadcast %16 : vector<1x962xf32> to vector<8x962xf32>
    %19 = vector.broadcast %17 : vector<8x1xf32> to vector<8x962xf32>
    %20 = arith.mulf %18, %19 : vector<8x962xf32>
    %21 = arith.addf %15, %20 : vector<8x962xf32>
    %22 = vector.extract_strided_slice %1 {offsets = [0, 30], sizes = [1, 962], strides = [1, 1]} : vector<1x1024xf32> to vector<1x962xf32>
    %23 = vector.extract_strided_slice %2 {offsets = [0, 3], sizes = [8, 1], strides = [1, 1]} : vector<8x9xf32> to vector<8x1xf32>
    %24 = vector.broadcast %22 : vector<1x962xf32> to vector<8x962xf32>
    %25 = vector.broadcast %23 : vector<8x1xf32> to vector<8x962xf32>
    %26 = arith.mulf %24, %25 : vector<8x962xf32>
    %27 = arith.addf %21, %26 : vector<8x962xf32>
    %28 = vector.extract_strided_slice %1 {offsets = [0, 31], sizes = [1, 962], strides = [1, 1]} : vector<1x1024xf32> to vector<1x962xf32>
    %29 = vector.extract_strided_slice %2 {offsets = [0, 4], sizes = [8, 1], strides = [1, 1]} : vector<8x9xf32> to vector<8x1xf32>
    %30 = vector.broadcast %28 : vector<1x962xf32> to vector<8x962xf32>
    %31 = vector.broadcast %29 : vector<8x1xf32> to vector<8x962xf32>
    %32 = arith.mulf %30, %31 : vector<8x962xf32>
    %33 = arith.addf %27, %32 : vector<8x962xf32>
    %34 = vector.extract_strided_slice %1 {offsets = [0, 32], sizes = [1, 962], strides = [1, 1]} : vector<1x1024xf32> to vector<1x962xf32>
    %35 = vector.extract_strided_slice %2 {offsets = [0, 5], sizes = [8, 1], strides = [1, 1]} : vector<8x9xf32> to vector<8x1xf32>
    %36 = vector.broadcast %34 : vector<1x962xf32> to vector<8x962xf32>
    %37 = vector.broadcast %35 : vector<8x1xf32> to vector<8x962xf32>
    %38 = arith.mulf %36, %37 : vector<8x962xf32>
    %39 = arith.addf %33, %38 : vector<8x962xf32>
    %40 = vector.extract_strided_slice %1 {offsets = [0, 60], sizes = [1, 962], strides = [1, 1]} : vector<1x1024xf32> to vector<1x962xf32>
    %41 = vector.extract_strided_slice %2 {offsets = [0, 6], sizes = [8, 1], strides = [1, 1]} : vector<8x9xf32> to vector<8x1xf32>
    %42 = vector.broadcast %40 : vector<1x962xf32> to vector<8x962xf32>
    %43 = vector.broadcast %41 : vector<8x1xf32> to vector<8x962xf32>
    %44 = arith.mulf %42, %43 : vector<8x962xf32>
    %45 = arith.addf %39, %44 : vector<8x962xf32>
    %46 = vector.extract_strided_slice %1 {offsets = [0, 61], sizes = [1, 962], strides = [1, 1]} : vector<1x1024xf32> to vector<1x962xf32>
    %47 = vector.extract_strided_slice %2 {offsets = [0, 7], sizes = [8, 1], strides = [1, 1]} : vector<8x9xf32> to vector<8x1xf32>
    %48 = vector.broadcast %46 : vector<1x962xf32> to vector<8x962xf32>
    %49 = vector.broadcast %47 : vector<8x1xf32> to vector<8x962xf32>
    %50 = arith.mulf %48, %49 : vector<8x962xf32>
    %51 = arith.addf %45, %50 : vector<8x962xf32>
    %52 = vector.extract_strided_slice %1 {offsets = [0, 62], sizes = [1, 962], strides = [1, 1]} : vector<1x1024xf32> to vector<1x962xf32>
    %53 = vector.extract_strided_slice %2 {offsets = [0, 8], sizes = [8, 1], strides = [1, 1]} : vector<8x9xf32> to vector<8x1xf32>
    %54 = vector.broadcast %52 : vector<1x962xf32> to vector<8x962xf32>
    %55 = vector.broadcast %53 : vector<8x1xf32> to vector<8x962xf32>
    %56 = arith.mulf %54, %55 : vector<8x962xf32>
    %57 = arith.addf %51, %56 : vector<8x962xf32>
    %c0_4 = arith.constant 0 : index
    %c0_5 = arith.constant 0 : index
    %58 = vector.load %arg4[%c0_4, %c0_5] : memref<8x1xf32, #tpu.memory_space<vmem>>, vector<8x1xf32>
    %59 = vector.broadcast %58 : vector<8x1xf32> to vector<8x962xf32>
    %60 = arith.addf %57, %59 : vector<8x962xf32>
    %cst_6 = arith.constant 0.000000e+00 : f32
    %61 = vector.broadcast %cst_6 : f32 to vector<8x962xf32>
    %62 = arith.maximumf %60, %61 : vector<8x962xf32>
    %c0_7 = arith.constant 0 : index
    %c0_8 = arith.constant 0 : index
    %63 = vector.load %arg2[%c0_7, %c0_8] : memref<1x962xf32, #tpu.memory_space<vmem>>, vector<1x962xf32>
    %64 = vector.broadcast %63 : vector<1x962xf32> to vector<8x962xf32>
    %65 = arith.mulf %62, %64 : vector<8x962xf32>
    %c0_9 = arith.constant 0 : index
    %c0_10 = arith.constant 0 : index
    %66 = vector.load %arg10[%c0_9, %c0_10] : memref<8x962xf32, #tpu.memory_space<vmem>>, vector<8x962xf32>
    tpu.vector_store %arg10[%c0_9, %c0_10], %65 {strides = array<i32>} : memref<8x962xf32, #tpu.memory_space<vmem>>, vector<8x962xf32>,
    %cst_11 = arith.constant 0.000000e+00 : f32
    %67 = vector.broadcast %cst_11 : f32 to vector<8x900xf32>
    %c0_12 = arith.constant 0 : index
    %c0_13 = arith.constant 0 : index
    %c0_14 = arith.constant 0 : index
    %68 = vector.load %arg5[%c0_12, %c0_13, %c0_14] : memref<9x8x8xf32, #tpu.memory_space<vmem>>, vector<1x8x8xf32>
    %69 = vector.shape_cast %68 : vector<1x8x8xf32> to vector<8x8xf32>
    %c0_15 = arith.constant 0 : index
    %c0_16 = arith.constant 0 : index
    %70 = vector.load %arg10[%c0_15, %c0_16] : memref<8x962xf32, #tpu.memory_space<vmem>>, vector<8x900xf32>
    %cst_17 = arith.constant dense<0.000000e+00> : vector<8x900xf32>
    %71 = tpu.matmul %69, %70, %cst_17 {dimension_numbers = #tpu.dot_dimension_numbers<[1], [0], [0], [1], [0, 0, 1, 1], [], []>} : vector<8x8xf32>, vector<8x900xf32>, vector<8x900xf32> -> vector<8x900xf32>
    %72 = arith.addf %67, %71 : vector<8x900xf32>
    %c1 = arith.constant 1 : index
    %c0_18 = arith.constant 0 : index
    %c0_19 = arith.constant 0 : index
    %73 = vector.load %arg5[%c1, %c0_18, %c0_19] : memref<9x8x8xf32, #tpu.memory_space<vmem>>, vector<1x8x8xf32>
    %74 = vector.shape_cast %73 : vector<1x8x8xf32> to vector<8x8xf32>
    %c0_20 = arith.constant 0 : index
    %c1_21 = arith.constant 1 : index
    %75 = vector.load %arg10[%c0_20, %c1_21] : memref<8x962xf32, #tpu.memory_space<vmem>>, vector<8x900xf32>
    %cst_22 = arith.constant dense<0.000000e+00> : vector<8x900xf32>
    %76 = tpu.matmul %74, %75, %cst_22 {dimension_numbers = #tpu.dot_dimension_numbers<[1], [0], [0], [1], [0, 0, 1, 1], [], []>} : vector<8x8xf32>, vector<8x900xf32>, vector<8x900xf32> -> vector<8x900xf32>
    %77 = arith.addf %72, %76 : vector<8x900xf32>
    %c2 = arith.constant 2 : index
    %c0_23 = arith.constant 0 : index
    %c0_24 = arith.constant 0 : index
    %78 = vector.load %arg5[%c2, %c0_23, %c0_24] : memref<9x8x8xf32, #tpu.memory_space<vmem>>, vector<1x8x8xf32>
    %79 = vector.shape_cast %78 : vector<1x8x8xf32> to vector<8x8xf32>
    %c0_25 = arith.constant 0 : index
    %c2_26 = arith.constant 2 : index
    %80 = vector.load %arg10[%c0_25, %c2_26] : memref<8x962xf32, #tpu.memory_space<vmem>>, vector<8x900xf32>
    %cst_27 = arith.constant dense<0.000000e+00> : vector<8x900xf32>
    %81 = tpu.matmul %79, %80, %cst_27 {dimension_numbers = #tpu.dot_dimension_numbers<[1], [0], [0], [1], [0, 0, 1, 1], [], []>} : vector<8x8xf32>, vector<8x900xf32>, vector<8x900xf32> -> vector<8x900xf32>
    %82 = arith.addf %77, %81 : vector<8x900xf32>
    %c3 = arith.constant 3 : index
    %c0_28 = arith.constant 0 : index
    %c0_29 = arith.constant 0 : index
    %83 = vector.load %arg5[%c3, %c0_28, %c0_29] : memref<9x8x8xf32, #tpu.memory_space<vmem>>, vector<1x8x8xf32>
    %84 = vector.shape_cast %83 : vector<1x8x8xf32> to vector<8x8xf32>
    %c0_30 = arith.constant 0 : index
    %c30 = arith.constant 30 : index
    %85 = vector.load %arg10[%c0_30, %c30] : memref<8x962xf32, #tpu.memory_space<vmem>>, vector<8x900xf32>
    %cst_31 = arith.constant dense<0.000000e+00> : vector<8x900xf32>
    %86 = tpu.matmul %84, %85, %cst_31 {dimension_numbers = #tpu.dot_dimension_numbers<[1], [0], [0], [1], [0, 0, 1, 1], [], []>} : vector<8x8xf32>, vector<8x900xf32>, vector<8x900xf32> -> vector<8x900xf32>
    %87 = arith.addf %82, %86 : vector<8x900xf32>
    %c4 = arith.constant 4 : index
    %c0_32 = arith.constant 0 : index
    %c0_33 = arith.constant 0 : index
    %88 = vector.load %arg5[%c4, %c0_32, %c0_33] : memref<9x8x8xf32, #tpu.memory_space<vmem>>, vector<1x8x8xf32>
    %89 = vector.shape_cast %88 : vector<1x8x8xf32> to vector<8x8xf32>
    %c0_34 = arith.constant 0 : index
    %c31 = arith.constant 31 : index
    %90 = vector.load %arg10[%c0_34, %c31] : memref<8x962xf32, #tpu.memory_space<vmem>>, vector<8x900xf32>
    %cst_35 = arith.constant dense<0.000000e+00> : vector<8x900xf32>
    %91 = tpu.matmul %89, %90, %cst_35 {dimension_numbers = #tpu.dot_dimension_numbers<[1], [0], [0], [1], [0, 0, 1, 1], [], []>} : vector<8x8xf32>, vector<8x900xf32>, vector<8x900xf32> -> vector<8x900xf32>
    %92 = arith.addf %87, %91 : vector<8x900xf32>
    %c5 = arith.constant 5 : index
    %c0_36 = arith.constant 0 : index
    %c0_37 = arith.constant 0 : index
    %93 = vector.load %arg5[%c5, %c0_36, %c0_37] : memref<9x8x8xf32, #tpu.memory_space<vmem>>, vector<1x8x8xf32>
    %94 = vector.shape_cast %93 : vector<1x8x8xf32> to vector<8x8xf32>
    %c0_38 = arith.constant 0 : index
    %c32 = arith.constant 32 : index
    %95 = vector.load %arg10[%c0_38, %c32] : memref<8x962xf32, #tpu.memory_space<vmem>>, vector<8x900xf32>
    %cst_39 = arith.constant dense<0.000000e+00> : vector<8x900xf32>
    %96 = tpu.matmul %94, %95, %cst_39 {dimension_numbers = #tpu.dot_dimension_numbers<[1], [0], [0], [1], [0, 0, 1, 1], [], []>} : vector<8x8xf32>, vector<8x900xf32>, vector<8x900xf32> -> vector<8x900xf32>
    %97 = arith.addf %92, %96 : vector<8x900xf32>
    %c6 = arith.constant 6 : index
    %c0_40 = arith.constant 0 : index
    %c0_41 = arith.constant 0 : index
    %98 = vector.load %arg5[%c6, %c0_40, %c0_41] : memref<9x8x8xf32, #tpu.memory_space<vmem>>, vector<1x8x8xf32>
    %99 = vector.shape_cast %98 : vector<1x8x8xf32> to vector<8x8xf32>
    %c0_42 = arith.constant 0 : index
    %c60 = arith.constant 60 : index
    %100 = vector.load %arg10[%c0_42, %c60] : memref<8x962xf32, #tpu.memory_space<vmem>>, vector<8x900xf32>
    %cst_43 = arith.constant dense<0.000000e+00> : vector<8x900xf32>
    %101 = tpu.matmul %99, %100, %cst_43 {dimension_numbers = #tpu.dot_dimension_numbers<[1], [0], [0], [1], [0, 0, 1, 1], [], []>} : vector<8x8xf32>, vector<8x900xf32>, vector<8x900xf32> -> vector<8x900xf32>
    %102 = arith.addf %97, %101 : vector<8x900xf32>
    %c7 = arith.constant 7 : index
    %c0_44 = arith.constant 0 : index
    %c0_45 = arith.constant 0 : index
    %103 = vector.load %arg5[%c7, %c0_44, %c0_45] : memref<9x8x8xf32, #tpu.memory_space<vmem>>, vector<1x8x8xf32>
    %104 = vector.shape_cast %103 : vector<1x8x8xf32> to vector<8x8xf32>
    %c0_46 = arith.constant 0 : index
    %c61 = arith.constant 61 : index
    %105 = vector.load %arg10[%c0_46, %c61] : memref<8x962xf32, #tpu.memory_space<vmem>>, vector<8x900xf32>
    %cst_47 = arith.constant dense<0.000000e+00> : vector<8x900xf32>
    %106 = tpu.matmul %104, %105, %cst_47 {dimension_numbers = #tpu.dot_dimension_numbers<[1], [0], [0], [1], [0, 0, 1, 1], [], []>} : vector<8x8xf32>, vector<8x900xf32>, vector<8x900xf32> -> vector<8x900xf32>
    %107 = arith.addf %102, %106 : vector<8x900xf32>
    %c8 = arith.constant 8 : index
    %c0_48 = arith.constant 0 : index
    %c0_49 = arith.constant 0 : index
    %108 = vector.load %arg5[%c8, %c0_48, %c0_49] : memref<9x8x8xf32, #tpu.memory_space<vmem>>, vector<1x8x8xf32>
    %109 = vector.shape_cast %108 : vector<1x8x8xf32> to vector<8x8xf32>
    %c0_50 = arith.constant 0 : index
    %c62 = arith.constant 62 : index
    %110 = vector.load %arg10[%c0_50, %c62] : memref<8x962xf32, #tpu.memory_space<vmem>>, vector<8x900xf32>
    %cst_51 = arith.constant dense<0.000000e+00> : vector<8x900xf32>
    %111 = tpu.matmul %109, %110, %cst_51 {dimension_numbers = #tpu.dot_dimension_numbers<[1], [0], [0], [1], [0, 0, 1, 1], [], []>} : vector<8x8xf32>, vector<8x900xf32>, vector<8x900xf32> -> vector<8x900xf32>
    %112 = arith.addf %107, %111 : vector<8x900xf32>
    %c0_52 = arith.constant 0 : index
    %c0_53 = arith.constant 0 : index
    %113 = vector.load %arg6[%c0_52, %c0_53] : memref<8x1xf32, #tpu.memory_space<vmem>>, vector<8x1xf32>
    %114 = vector.broadcast %113 : vector<8x1xf32> to vector<8x900xf32>
    %115 = arith.addf %112, %114 : vector<8x900xf32>
    %cst_54 = arith.constant 0.000000e+00 : f32
    %116 = vector.broadcast %cst_54 : f32 to vector<8x900xf32>
    %117 = arith.maximumf %115, %116 : vector<8x900xf32>
    %118 = vector.extract_strided_slice %60 {offsets = [0, 31], sizes = [8, 900], strides = [1, 1]} : vector<8x962xf32> to vector<8x900xf32>
    %119 = arith.addf %117, %118 : vector<8x900xf32>
    %c0_55 = arith.constant 0 : index
    %c0_56 = arith.constant 0 : index
    %120 = vector.load %arg8[%c0_55, %c0_56] : memref<1x10xf32, #tpu.memory_space<vmem>>, vector<1x10xf32>
    %121 = vector.extract_strided_slice %119 {offsets = [0, 0], sizes = [1, 900], strides = [1, 1]} : vector<8x900xf32> to vector<1x900xf32>
    %c0_57 = arith.constant 0 : index
    %c0_58 = arith.constant 0 : index
    %c0_59 = arith.constant 0 : index
    %122 = vector.load %arg7[%c0_57, %c0_58, %c0_59] : memref<8x10x900xf32, #tpu.memory_space<vmem>>, vector<1x10x900xf32>
    %123 = vector.shape_cast %122 : vector<1x10x900xf32> to vector<10x900xf32>
    %cst_60 = arith.constant dense<0.000000e+00> : vector<1x10xf32>
    %124 = tpu.matmul %121, %123, %cst_60 {dimension_numbers = #tpu.dot_dimension_numbers<[1], [1], [0], [0], [0, 0, 1, 0], [], []>} : vector<1x900xf32>, vector<10x900xf32>, vector<1x10xf32> -> vector<1x10xf32>
    %125 = arith.addf %120, %124 : vector<1x10xf32>
    %126 = vector.extract_strided_slice %119 {offsets = [1, 0], sizes = [1, 900], strides = [1, 1]} : vector<8x900xf32> to vector<1x900xf32>
    %c1_61 = arith.constant 1 : index
    %c0_62 = arith.constant 0 : index
    %c0_63 = arith.constant 0 : index
    %127 = vector.load %arg7[%c1_61, %c0_62, %c0_63] : memref<8x10x900xf32, #tpu.memory_space<vmem>>, vector<1x10x900xf32>
    %128 = vector.shape_cast %127 : vector<1x10x900xf32> to vector<10x900xf32>
    %cst_64 = arith.constant dense<0.000000e+00> : vector<1x10xf32>
    %129 = tpu.matmul %126, %128, %cst_64 {dimension_numbers = #tpu.dot_dimension_numbers<[1], [1], [0], [0], [0, 0, 1, 0], [], []>} : vector<1x900xf32>, vector<10x900xf32>, vector<1x10xf32> -> vector<1x10xf32>
    %130 = arith.addf %125, %129 : vector<1x10xf32>
    %131 = vector.extract_strided_slice %119 {offsets = [2, 0], sizes = [1, 900], strides = [1, 1]} : vector<8x900xf32> to vector<1x900xf32>
    %c2_65 = arith.constant 2 : index
    %c0_66 = arith.constant 0 : index
    %c0_67 = arith.constant 0 : index
    %132 = vector.load %arg7[%c2_65, %c0_66, %c0_67] : memref<8x10x900xf32, #tpu.memory_space<vmem>>, vector<1x10x900xf32>
    %133 = vector.shape_cast %132 : vector<1x10x900xf32> to vector<10x900xf32>
    %cst_68 = arith.constant dense<0.000000e+00> : vector<1x10xf32>
    %134 = tpu.matmul %131, %133, %cst_68 {dimension_numbers = #tpu.dot_dimension_numbers<[1], [1], [0], [0], [0, 0, 1, 0], [], []>} : vector<1x900xf32>, vector<10x900xf32>, vector<1x10xf32> -> vector<1x10xf32>
    %135 = arith.addf %130, %134 : vector<1x10xf32>
    %136 = vector.extract_strided_slice %119 {offsets = [3, 0], sizes = [1, 900], strides = [1, 1]} : vector<8x900xf32> to vector<1x900xf32>
    %c3_69 = arith.constant 3 : index
    %c0_70 = arith.constant 0 : index
    %c0_71 = arith.constant 0 : index
    %137 = vector.load %arg7[%c3_69, %c0_70, %c0_71] : memref<8x10x900xf32, #tpu.memory_space<vmem>>, vector<1x10x900xf32>
    %138 = vector.shape_cast %137 : vector<1x10x900xf32> to vector<10x900xf32>
    %cst_72 = arith.constant dense<0.000000e+00> : vector<1x10xf32>
    %139 = tpu.matmul %136, %138, %cst_72 {dimension_numbers = #tpu.dot_dimension_numbers<[1], [1], [0], [0], [0, 0, 1, 0], [], []>} : vector<1x900xf32>, vector<10x900xf32>, vector<1x10xf32> -> vector<1x10xf32>
    %140 = arith.addf %135, %139 : vector<1x10xf32>
    %141 = vector.extract_strided_slice %119 {offsets = [4, 0], sizes = [1, 900], strides = [1, 1]} : vector<8x900xf32> to vector<1x900xf32>
    %c4_73 = arith.constant 4 : index
    %c0_74 = arith.constant 0 : index
    %c0_75 = arith.constant 0 : index
    %142 = vector.load %arg7[%c4_73, %c0_74, %c0_75] : memref<8x10x900xf32, #tpu.memory_space<vmem>>, vector<1x10x900xf32>
    %143 = vector.shape_cast %142 : vector<1x10x900xf32> to vector<10x900xf32>
    %cst_76 = arith.constant dense<0.000000e+00> : vector<1x10xf32>
    %144 = tpu.matmul %141, %143, %cst_76 {dimension_numbers = #tpu.dot_dimension_numbers<[1], [1], [0], [0], [0, 0, 1, 0], [], []>} : vector<1x900xf32>, vector<10x900xf32>, vector<1x10xf32> -> vector<1x10xf32>
    %145 = arith.addf %140, %144 : vector<1x10xf32>
    %146 = vector.extract_strided_slice %119 {offsets = [5, 0], sizes = [1, 900], strides = [1, 1]} : vector<8x900xf32> to vector<1x900xf32>
    %c5_77 = arith.constant 5 : index
    %c0_78 = arith.constant 0 : index
    %c0_79 = arith.constant 0 : index
    %147 = vector.load %arg7[%c5_77, %c0_78, %c0_79] : memref<8x10x900xf32, #tpu.memory_space<vmem>>, vector<1x10x900xf32>
    %148 = vector.shape_cast %147 : vector<1x10x900xf32> to vector<10x900xf32>
    %cst_80 = arith.constant dense<0.000000e+00> : vector<1x10xf32>
    %149 = tpu.matmul %146, %148, %cst_80 {dimension_numbers = #tpu.dot_dimension_numbers<[1], [1], [0], [0], [0, 0, 1, 0], [], []>} : vector<1x900xf32>, vector<10x900xf32>, vector<1x10xf32> -> vector<1x10xf32>
    %150 = arith.addf %145, %149 : vector<1x10xf32>
    %151 = vector.extract_strided_slice %119 {offsets = [6, 0], sizes = [1, 900], strides = [1, 1]} : vector<8x900xf32> to vector<1x900xf32>
    %c6_81 = arith.constant 6 : index
    %c0_82 = arith.constant 0 : index
    %c0_83 = arith.constant 0 : index
    %152 = vector.load %arg7[%c6_81, %c0_82, %c0_83] : memref<8x10x900xf32, #tpu.memory_space<vmem>>, vector<1x10x900xf32>
    %153 = vector.shape_cast %152 : vector<1x10x900xf32> to vector<10x900xf32>
    %cst_84 = arith.constant dense<0.000000e+00> : vector<1x10xf32>
    %154 = tpu.matmul %151, %153, %cst_84 {dimension_numbers = #tpu.dot_dimension_numbers<[1], [1], [0], [0], [0, 0, 1, 0], [], []>} : vector<1x900xf32>, vector<10x900xf32>, vector<1x10xf32> -> vector<1x10xf32>
    %155 = arith.addf %150, %154 : vector<1x10xf32>
    %156 = vector.extract_strided_slice %119 {offsets = [7, 0], sizes = [1, 900], strides = [1, 1]} : vector<8x900xf32> to vector<1x900xf32>
    %c7_85 = arith.constant 7 : index
    %c0_86 = arith.constant 0 : index
    %c0_87 = arith.constant 0 : index
    %157 = vector.load %arg7[%c7_85, %c0_86, %c0_87] : memref<8x10x900xf32, #tpu.memory_space<vmem>>, vector<1x10x900xf32>
    %158 = vector.shape_cast %157 : vector<1x10x900xf32> to vector<10x900xf32>
    %cst_88 = arith.constant dense<0.000000e+00> : vector<1x10xf32>
    %159 = tpu.matmul %156, %158, %cst_88 {dimension_numbers = #tpu.dot_dimension_numbers<[1], [1], [0], [0], [0, 0, 1, 0], [], []>} : vector<1x900xf32>, vector<10x900xf32>, vector<1x10xf32> -> vector<1x10xf32>
    %160 = arith.addf %155, %159 : vector<1x10xf32>
    %c0_89 = arith.constant 0 : index
    %c0_90 = arith.constant 0 : index
    %c0_91 = arith.constant 0 : index
    %161 = vector.load %arg9[%c0_89, %c0_90, %c0_91] : memref<1x1x10xf32, #tpu.memory_space<vmem>>, vector<1x1x10xf32>
    %162 = vector.shape_cast %161 : vector<1x1x10xf32> to vector<1x10xf32>
    %163 = vector.shape_cast %160 : vector<1x10xf32> to vector<1x1x10xf32>
    tpu.vector_store %arg9[%c0_89, %c0_90, %c0_91], %163 {strides = array<i32>} : memref<1x1x10xf32, #tpu.memory_space<vmem>>, vector<1x1x10xf32>,
    return
  }
  func.func @transform_0(%arg0: i32) -> (i32, i32, i32) {
    %c0_i32 = arith.constant 0 : i32
    %c0_i32_0 = arith.constant 0 : i32
    %c0_i32_1 = arith.constant 0 : i32
    return %arg0, %c0_i32, %c0_i32_0 : i32, i32, i32
  }
  func.func @transform_1(%arg0: i32) -> (i32, i32) {
    %c0_i32 = arith.constant 0 : i32
    %c0_i32_0 = arith.constant 0 : i32
    %c0_i32_1 = arith.constant 0 : i32
    return %c0_i32, %c0_i32_0 : i32, i32
  }
  func.func @transform_2(%arg0: i32) -> (i32, i32) {
    %c0_i32 = arith.constant 0 : i32
    %c0_i32_0 = arith.constant 0 : i32
    %c0_i32_1 = arith.constant 0 : i32
    return %c0_i32, %c0_i32_0 : i32, i32
  }
  func.func @transform_3(%arg0: i32) -> (i32, i32) {
    %c0_i32 = arith.constant 0 : i32
    %c0_i32_0 = arith.constant 0 : i32
    %c0_i32_1 = arith.constant 0 : i32
    return %c0_i32, %c0_i32_0 : i32, i32
  }
  func.func @transform_4(%arg0: i32) -> (i32, i32, i32) {
    %c0_i32 = arith.constant 0 : i32
    %c0_i32_0 = arith.constant 0 : i32
    %c0_i32_1 = arith.constant 0 : i32
    %c0_i32_2 = arith.constant 0 : i32
    return %c0_i32, %c0_i32_0, %c0_i32_1 : i32, i32, i32
  }
  func.func @transform_5(%arg0: i32) -> (i32, i32) {
    %c0_i32 = arith.constant 0 : i32
    %c0_i32_0 = arith.constant 0 : i32
    %c0_i32_1 = arith.constant 0 : i32
    return %c0_i32, %c0_i32_0 : i32, i32
  }
  func.func @transform_6(%arg0: i32) -> (i32, i32, i32) {
    %c0_i32 = arith.constant 0 : i32
    %c0_i32_0 = arith.constant 0 : i32
    %c0_i32_1 = arith.constant 0 : i32
    %c0_i32_2 = arith.constant 0 : i32
    return %c0_i32, %c0_i32_0, %c0_i32_1 : i32, i32, i32
  }
  func.func @transform_7(%arg0: i32) -> (i32, i32) {
    %c0_i32 = arith.constant 0 : i32
    %c0_i32_0 = arith.constant 0 : i32
    %c0_i32_1 = arith.constant 0 : i32
    return %c0_i32, %c0_i32_0 : i32, i32
  }
  func.func @transform_8(%arg0: i32) -> (i32, i32, i32) {
    %c0_i32 = arith.constant 0 : i32
    %c0_i32_0 = arith.constant 0 : i32
    %c0_i32_1 = arith.constant 0 : i32
    return %arg0, %c0_i32, %c0_i32_0 : i32, i32, i32
  }
}

</mosaic_0001>

<bundles_post_ra>
// kernel: tpu_custom_call.1
= control target key start
LH: loop header
LB: loop body
LE: loop exit
PB: predicated region body
PF: predicated region fallthrough
CT: control target
= control target key end

     0   :  { %13 = vsyncpa [#allocation4], 0  ;;  %s8528_s0 = inlined_call_operand.vmem [shape: f32[2,1,1024], index: 0, kind: input, shape index: {}]   ;;  %s8529_s1 = inlined_call_operand.vmem [shape: f32[1,962], index: 1, kind: input, shape index: {}]   ;;  %s8530_s2 = inlined_call_operand.vmem [shape: f32[8,9], index: 2, kind: input, shape index: {}]   ;;  %s8531_s3 = inlined_call_operand.vmem [shape: f32[8,1], index: 3, kind: input, shape index: {}]   ;;  %s8532_s4 = inlined_call_operand.vmem [shape: f32[9,8,8], index: 4, kind: input, shape index: {}]   ;;  %s8533_s5 = inlined_call_operand.vmem [shape: f32[8,1], index: 5, kind: input, shape index: {}]   ;;  %s8534_s6 = inlined_call_operand.vmem [shape: f32[8,10,900], index: 6, kind: input, shape index: {}]   ;;  %s8535_s7 = inlined_call_operand.vmem [shape: f32[1,10], index: 7, kind: input, shape index: {}]   ;;  %s8536_s8 = inlined_call_operand.hbm [shape: f32[2,1,10], index: 8, kind: output, shape index: {}]  }
   0x1   :  { %15 = vsyncpa [#allocation4 + $0x1], 0  ;;  %s6927_s27 = smov 0   ;;  %s6929_s28 = smov 0  }
   0x2   :  { %s6931_s29 = smov 0   ;;  %s6933_s30 = smov 0  }
   0x3 LB: > { %s6948_s9 = sadd.s32 4294967295, %s6861_s30   ;;  %s6546_s10 = sadd.s32 4294967294, %s6861_s30   ;;  %s6861_s30 = sphi %s6933_s30, %s8590_s30   ;;  %s6857_s29 = sphi %s6931_s29, %s8589_s29   ;;  %s6853_s28 = sphi %s6929_s28, %s8588_s28   ;;  %s6849_s27 = sphi %s6927_s27, %s8587_s27  }
   0x4   : > { %s6952_s11 = sadd.s32 1, %s6861_s30   ;;  %s201_s12 = sadd.s32 1, %s6857_s29 }
   0x5   : > { %s198_s13 = ssub.s32 %s6861_s30, %s6952_s11  ;;  %p211_p0 = scmp.ne.s32.totalorder %s6857_s29, %s6853_s28 }
   0x6   : > { %p199_p1 = scmp.eq.s32.totalorder %s198_s13, 0  ;;  %p212_p2 = scmp.eq.s32.totalorder %s6948_s9, 1 }
   0x7   : > { %p217_p3 = scmp.ne.s32.totalorder %s6853_s28, %s6849_s27  ;;  %p218_p4 = scmp.eq.s32.totalorder %s6546_s10, 1 }
   0x8   : > { %s6963_s14 = scalar_select %p199_p1, %s6857_s29, %s201_s12  }
   0x9   : > { %p6965_p5 = por %p212_p2, %p211_p0  ;;  %p6969_p6 = por %p218_p4, %p217_p3 }
   0xa   : > { %p6549_p7 = scmp.ge.s32.totalorder %s6861_s30, 1  ;;  %p264_p8 = scmp.lt.s32.totalorder %s6861_s30, 3 }
   0xc   : > { %p265_p9 = pnand %p6549_p7, %p264_p8 }
   0xe   : > { %268 = sbr.rel (%p265_p9) target bundleno = 1170 (0x492), region = 52 }
  0x13   : > { %v301_v0 = vld [vmem:[%s8530_s2] sm:$0xff]  ;;  %v6863_v1 = vmov 1   ;;  %v6864_v2 = vmov 3   ;;  %v6865_v3 = vmov 2   ;;  %v6866_v4 = vmov 4   ;;  %p296_p10 = scmp.lt.s32.totalorder %s6948_s9, 1 }
  0x14   : > { %6791 = vset.pattern.permute.xlu0 %v6863_v1  ;;  %6793 = vset.pattern.permute.xlu1 %v6864_v2  ;;  %v6867_v5 = vmov 5   ;;  %v6868_v6 = vmov 6   ;;  %v6869_v7 = vmov 7   ;;  %v6870_v8 = vmov 0   ;;  %v844_v10 = vld [vmem:[%s8531_s3] sm:$0xff]  ;;  %s6872_s26 = smov 127  }
  0x15   : > { %365 = vperm.xlu0 %6791, %v301_v0   ;;  %485 = vperm.xlu1 %6793, %v301_v0   ;;  %v6871_v9 = vmov 8   ;;  %s297_s21 = scalar_select %p296_p10, %s6948_s9, 1  ;;  %v303_v11 = vlaneseq  ;;  %vm400_vm0 = vcmask 1039360   ;;  %vm460_vm1 = vcmask 1031168  }
  0x16   : > { %s6873_s10 = smov 126   ;;  %s6874_s12 = smov 98   ;;  %vm520_vm2 = vcmask 801792   ;;  %vm580_vm3 = vcmask 793600   ;;  %vm640_vm4 = vcmask 785408   ;;  %vm700_vm5 = vcmask 556032  }
  0x17   : > { %s6550_s22 = sshll.u32 %s297_s21, 3  ;;  %v6983_v12 = vshrl.u32 %v303_v11, 7  ;;  %s6875_s13 = smov 97   ;;  %vm760_vm6 = vcmask 547840   ;;  %vm820_vm7 = vcmask 539648   ;;  %vm974_vm8 = vcmask 64512  }
  0x18   : > { %s299_s25 = scalar_lea.vmem %s8528_s0, %s6550_s22  ;;  %s6876_s17 = smov 96   ;;  %vm3931_vm9 = vcmask 31744   ;;  %vm6476_vm10 = vcmask 73728  }
  0x19   : > { %6792 = vset.pattern.permute.xlu0 %v6865_v3  ;;  %6794 = vset.pattern.permute.xlu1 %v6866_v4  ;;  %8553 = vst [vmem:[#allocation6_spill] sm:$0xff] %v6983_v12  ;;  %v8541_v13 = vsub.s32 3, %v6983_v12  ;;  %v8544_v14 = vsub.s32 1, %v6983_v12  ;;  %v300_v15 = vld [vmem:[%s299_s25] sm:$0xff]  ;;  %v8540_v18 = vsub.s32 4, %v6983_v12  ;;  %v8542_v19 = vsub.s32 2, %v6983_v12 }
  0x1a   : > { %425 = vperm.xlu0 %6792, %v301_v0   ;;  %545 = vperm.xlu1 %6794, %v301_v0   ;;  %v8543_v21 = vsub.s32 0, %v6983_v12  ;;  %v8538_v30 = vsub.s32 5, %v6983_v12  ;;  %v8537_v34 = vsub.s32 6, %v6983_v12  ;;  %v8539_v40 = vsub.s32 7, %v6983_v12  ;;  %s6877_s18 = smov 68   ;;  %s6878_s19 = smov 67  }
  0x1b   : > { %v6992_v16 = vrot.slane %v300_v15, %v8541_v13  ;;  %v6996_v17 = vrot.slane %v300_v15, %v8544_v14  ;;  %v7005_v24 = vrot.slane %v300_v15, %v8540_v18  ;;  %v7009_v25 = vrot.slane %v300_v15, %v8542_v19  ;;  %s6879_s20 = smov 66   ;;  %v7263_v19 = vld [vmem:[%s8529_s1] sm:$0xff] }
  0x1c   : > { %v7017_v29 = vrot.slane %v300_v15, %v8543_v21  ;;  %v7026_v33 = vrot.slane %v300_v15, %v8538_v30  ;;  %v7035_v37 = vrot.slane %v300_v15, %v8537_v34  ;;  %v7048_v44 = vrot.slane %v300_v15, %v8539_v40 }
  0x1e   : > { %6795 = vset.pattern.permute.xlu1 %v6867_v5  ;;  %6796 = vset.pattern.permute.xlu0 %v6868_v6 }
  0x1f   : > { %605 = vperm.xlu1 %6795, %v301_v0   ;;  %665 = vperm.xlu0 %6796, %v301_v0  }
  0x23   : > { %6797 = vset.pattern.permute.xlu1 %v6869_v7  ;;  %6799 = vset.pattern.permute.xlu0 %v6870_v8 }
  0x24   : > { %725 = vperm.xlu1 %6797, %v301_v0   ;;  %345 = vperm.xlu0 %6799, %v301_v0  }
  0x28   : > { %6798 = vset.pattern.permute.xlu1 %v6871_v9 }
  0x29   : > { %785 = vperm.xlu1 %6798, %v301_v0  }
  0x2d   : > { %6800 = vset.pattern.permute.xlu1 %v6870_v8 }
  0x2e   : > { %847 = vperm.xlu1 %6800, %v844_v10  }
  0x90   : > { %v366_v20 = vpop.permute.xlu0 %365  ;;  %v486_v41 = vpop.permute.xlu1 %485 }
  0x91   : > { %v371_v22 = vmul.f32 %v366_v20, %v6992_v16  ;;  %v369_v23 = vmul.f32 %v366_v20, %v6996_v17  ;;  %v372_v26 = vmul.f32 %v366_v20, %v7005_v24  ;;  %v370_v27 = vmul.f32 %v366_v20, %v7009_v25 }
  0x92   : > { %v368_v32 = vmul.f32 %v366_v20, %v7017_v29  ;;  %v373_v36 = vmul.f32 %v366_v20, %v7026_v33  ;;  %v374_v38 = vmul.f32 %v366_v20, %v7035_v37  ;;  %v489_v45 = vmul.f32 %v486_v41, %v6996_v17 }
  0x93   : > { %390 = vrot.lane.b32.xlu0 %v371_v22, %s6872_s26  ;;  %386 = vrot.lane.b32.xlu1 %v369_v23, %s6872_s26  ;;  %v375_v46 = vmul.f32 %v366_v20, %v7048_v44  ;;  %v491_v47 = vmul.f32 %v486_v41, %v6992_v16  ;;  %v490_v50 = vmul.f32 %v486_v41, %v7009_v25 }
  0x94   : > { %v492_v52 = vmul.f32 %v486_v41, %v7005_v24  ;;  %v488_v53 = vmul.f32 %v486_v41, %v7017_v29  ;;  %v493_v57 = vmul.f32 %v486_v41, %v7026_v33  ;;  %v494_v58 = vmul.f32 %v486_v41, %v7035_v37 }
  0x95   : > { %v426_v28 = vpop.permute.xlu0 %425  ;;  %v546_v51 = vpop.permute.xlu1 %545  ;;  %v495_v0 = vmul.f32 %v486_v41, %v7048_v44 }
  0x96   : > { %v429_v31 = vmul.f32 %v426_v28, %v6996_v17  ;;  %v431_v35 = vmul.f32 %v426_v28, %v6992_v16  ;;  %v430_v39 = vmul.f32 %v426_v28, %v7009_v25  ;;  %v432_v42 = vmul.f32 %v426_v28, %v7005_v24 }
  0x97   : > { %392 = vrot.lane.b32.xlu0 %v372_v26, %s6872_s26  ;;  %388 = vrot.lane.b32.xlu1 %v370_v27, %s6872_s26  ;;  %v428_v43 = vmul.f32 %v426_v28, %v7017_v29  ;;  %v433_v48 = vmul.f32 %v426_v28, %v7026_v33  ;;  %v434_v49 = vmul.f32 %v426_v28, %v7035_v37 }
  0x98   : > { %v549_v54 = vmul.f32 %v546_v51, %v6996_v17  ;;  %v435_v55 = vmul.f32 %v426_v28, %v7048_v44  ;;  %v551_v56 = vmul.f32 %v546_v51, %v6992_v16  ;;  %v550_v59 = vmul.f32 %v546_v51, %v7009_v25 }
  0x99   : > { %v552_v61 = vmul.f32 %v546_v51, %v7005_v24  ;;  %v548_v62 = vmul.f32 %v546_v51, %v7017_v29  ;;  %v553_v2 = vmul.f32 %v546_v51, %v7026_v33  ;;  %v554_v3 = vmul.f32 %v546_v51, %v7035_v37 }
  0x9a   : > { %v606_v60 = vpop.permute.xlu1 %605  ;;  %v666_v5 = vpop.permute.xlu0 %665  ;;  %v555_v9 = vmul.f32 %v546_v51, %v7048_v44 }
  0x9b   : > { %446 = vrot.lane.b32.xlu0 %v429_v31, %s6873_s10  ;;  %384 = vrot.lane.b32.xlu1 %v368_v32, %s6872_s26  ;;  %v609_v63 = vmul.f32 %v606_v60, %v6996_v17  ;;  %v611_v1 = vmul.f32 %v606_v60, %v6992_v16  ;;  %v610_v4 = vmul.f32 %v606_v60, %v7009_v25 }
  0x9c   : > { %v612_v6 = vmul.f32 %v606_v60, %v7005_v24  ;;  %v608_v7 = vmul.f32 %v606_v60, %v7017_v29  ;;  %v669_v8 = vmul.f32 %v666_v5, %v6996_v17  ;;  %v671_v10 = vmul.f32 %v666_v5, %v6992_v16 }
  0x9d   : > { %v613_v11 = vmul.f32 %v606_v60, %v7026_v33  ;;  %v614_v15 = vmul.f32 %v606_v60, %v7035_v37  ;;  %v670_v20 = vmul.f32 %v666_v5, %v7009_v25  ;;  %v672_v23 = vmul.f32 %v666_v5, %v7005_v24 }
  0x9e   : > { %v668_v26 = vmul.f32 %v666_v5, %v7017_v29  ;;  %v615_v28 = vmul.f32 %v606_v60, %v7048_v44  ;;  %v673_v32 = vmul.f32 %v666_v5, %v7026_v33 }
  0x9f   : > { %450 = vrot.lane.b32.xlu0 %v431_v35, %s6873_s10  ;;  %394 = vrot.lane.b32.xlu1 %v373_v36, %s6872_s26  ;;  %v726_v22 = vpop.permute.xlu1 %725 }
  0xa0   : > { %v729_v27 = vmul.f32 %v726_v22, %v6996_v17  ;;  %v731_v31 = vmul.f32 %v726_v22, %v6992_v16  ;;  %v728_v35 = vmul.f32 %v726_v22, %v7017_v29  ;;  %v730_v36 = vmul.f32 %v726_v22, %v7009_v25 }
  0xa3   : > { %396 = vrot.lane.b32.xlu0 %v374_v38, %s6872_s26  ;;  %448 = vrot.lane.b32.xlu1 %v430_v39, %s6873_s10  ;;  %v675_v38 = vmul.f32 %v666_v5, %v7048_v44  ;;  %v674_v39 = vmul.f32 %v666_v5, %v7035_v37 }
  0xa4   : > { %v786_v41 = vpop.permute.xlu1 %785 }
  0xa7   : > { %452 = vrot.lane.b32.xlu0 %v432_v42, %s6873_s10  ;;  %444 = vrot.lane.b32.xlu1 %v428_v43, %s6873_s10  ;;  %v733_v42 = vmul.f32 %v726_v22, %v7026_v33  ;;  %v732_v43 = vmul.f32 %v726_v22, %v7005_v24 }
  0xab   : > { %506 = vrot.lane.b32.xlu0 %v489_v45, %s6874_s12  ;;  %398 = vrot.lane.b32.xlu1 %v375_v46, %s6872_s26  ;;  %v790_v45 = vmul.f32 %v786_v41, %v7009_v25  ;;  %v789_v46 = vmul.f32 %v786_v41, %v6996_v17 }
  0xaf   : > { %510 = vrot.lane.b32.xlu0 %v491_v47, %s6874_s12  ;;  %454 = vrot.lane.b32.xlu1 %v433_v48, %s6873_s10  ;;  %v7140_v47 = vpop.permute.xlu1 %847  ;;  %v7142_v48 = vpop.permute.xlu0 %345 }
  0xb0   : > { %v351_v30 = vmul.f32 %v7142_v48, %v6992_v16  ;;  %v350_v40 = vmul.f32 %v7142_v48, %v7009_v25  ;;  %v349_v18 = vmul.f32 %v7142_v48, %v6996_v17  ;;  %v348_v13 = vmul.f32 %v7142_v48, %v7017_v29 }
  0xb1   : > { %v352_v21 = vmul.f32 %v7142_v48, %v7005_v24  ;;  %v354_v25 = vmul.f32 %v7142_v48, %v7035_v37  ;;  %v355_v17 = vmul.f32 %v7142_v48, %v7048_v44 }
  0xb3   : > { %456 = vrot.lane.b32.xlu0 %v434_v49, %s6873_s10  ;;  %508 = vrot.lane.b32.xlu1 %v490_v50, %s6874_s12  ;;  %v788_v49 = vmul.f32 %v786_v41, %v7017_v29  ;;  %v791_v50 = vmul.f32 %v786_v41, %v6992_v16  ;;  %v353_v16 = vmul.f32 %v7142_v48, %v7026_v33 }
  0xb7   : > { %512 = vrot.lane.b32.xlu0 %v492_v52, %s6874_s12  ;;  %504 = vrot.lane.b32.xlu1 %v488_v53, %s6874_s12  ;;  %v735_v53 = vmul.f32 %v726_v22, %v7048_v44 }
  0xbb   : > { %566 = vrot.lane.b32.xlu0 %v549_v54, %s6875_s13  ;;  %458 = vrot.lane.b32.xlu1 %v435_v55, %s6873_s10  ;;  %v734_v54 = vmul.f32 %v726_v22, %v7035_v37 }
  0xbf   : > { %570 = vrot.lane.b32.xlu0 %v551_v56, %s6875_s13  ;;  %514 = vrot.lane.b32.xlu1 %v493_v57, %s6874_s12  ;;  %v793_v57 = vmul.f32 %v786_v41, %v7026_v33 }
  0xc3   : > { %516 = vrot.lane.b32.xlu0 %v494_v58, %s6874_s12  ;;  %568 = vrot.lane.b32.xlu1 %v550_v59, %s6875_s13  ;;  %v792_v58 = vmul.f32 %v786_v41, %v7005_v24 }
  0xc7   : > { %572 = vrot.lane.b32.xlu0 %v552_v61, %s6875_s13  ;;  %564 = vrot.lane.b32.xlu1 %v548_v62, %s6875_s13  ;;  %v795_v61 = vmul.f32 %v786_v41, %v7048_v44  ;;  %v794_v62 = vmul.f32 %v786_v41, %v7035_v37  ;;  %v8558_v44 = vsub.s32 1, %v6983_v12 }
  0xc9   : > { %v7289_v48 = vrot.slane %v7263_v19, %v8558_v44  ;;  %v8560_v44 = vsub.s32 0, %v6983_v12 }
  0xcb   : > { %626 = vrot.lane.b32.xlu0 %v609_v63, %s6876_s17  ;;  %518 = vrot.lane.b32.xlu1 %v495_v0, %s6874_s12  ;;  %8559 = vst [vmem:[#allocation11_spill] sm:$0xff] %v7289_v48  ;;  %v7306_v48 = vrot.slane %v7263_v19, %v8560_v44 }
  0xcd   : > { %8561 = vst [vmem:[#allocation12_spill] sm:$0xff] %v7306_v48 }
  0xcf   : > { %630 = vrot.lane.b32.xlu0 %v611_v1, %s6876_s17  ;;  %574 = vrot.lane.b32.xlu1 %v553_v2, %s6875_s13 }
  0xd3   : > { %576 = vrot.lane.b32.xlu0 %v554_v3, %s6875_s13  ;;  %628 = vrot.lane.b32.xlu1 %v610_v4, %s6876_s17 }
  0xd7   : > { %632 = vrot.lane.b32.xlu0 %v612_v6, %s6876_s17  ;;  %624 = vrot.lane.b32.xlu1 %v608_v7, %s6876_s17 }
  0xdb   : > { %686 = vrot.lane.b32.xlu0 %v669_v8, %s6877_s18  ;;  %578 = vrot.lane.b32.xlu1 %v555_v9, %s6875_s13 }
  0xdf   : > { %690 = vrot.lane.b32.xlu0 %v671_v10, %s6877_s18  ;;  %634 = vrot.lane.b32.xlu1 %v613_v11, %s6876_s17 }
  0xe3   : > { %636 = vrot.lane.b32.xlu0 %v614_v15, %s6876_s17  ;;  %688 = vrot.lane.b32.xlu1 %v670_v20, %s6877_s18 }
  0xe7   : > { %692 = vrot.lane.b32.xlu0 %v672_v23, %s6877_s18  ;;  %684 = vrot.lane.b32.xlu1 %v668_v26, %s6877_s18 }
  0xeb   : > { %746 = vrot.lane.b32.xlu0 %v729_v27, %s6878_s19  ;;  %638 = vrot.lane.b32.xlu1 %v615_v28, %s6876_s17 }
  0xef   : > { %750 = vrot.lane.b32.xlu0 %v731_v31, %s6878_s19  ;;  %694 = vrot.lane.b32.xlu1 %v673_v32, %s6877_s18 }
  0xf3   : > { %744 = vrot.lane.b32.xlu0 %v728_v35, %s6878_s19  ;;  %748 = vrot.lane.b32.xlu1 %v730_v36, %s6878_s19 }
  0xf7   : > { %698 = vrot.lane.b32.xlu0 %v675_v38, %s6877_s18  ;;  %696 = vrot.lane.b32.xlu1 %v674_v39, %s6877_s18 }
  0xfb   : > { %754 = vrot.lane.b32.xlu0 %v733_v42, %s6878_s19  ;;  %752 = vrot.lane.b32.xlu1 %v732_v43, %s6878_s19 }
  0xff   : > { %808 = vrot.lane.b32.xlu0 %v790_v45, %s6879_s20  ;;  %806 = vrot.lane.b32.xlu1 %v789_v46, %s6879_s20 }
 0x103   : > { %804 = vrot.lane.b32.xlu0 %v788_v49, %s6879_s20  ;;  %810 = vrot.lane.b32.xlu1 %v791_v50, %s6879_s20 }
 0x105   : > { %v7148_v51 = vpop.permute.xlu0 %390  ;;  %v7150_v52 = vpop.permute.xlu1 %386 }
 0x107   : > { %758 = vrot.lane.b32.xlu0 %v735_v53, %s6878_s19  ;;  %756 = vrot.lane.b32.xlu1 %v734_v54, %s6878_s19 }
 0x109   : > { %v7156_v55 = vpop.permute.xlu0 %392  ;;  %v7158_v56 = vpop.permute.xlu1 %388 }
 0x10a   : > { %v404_v29 = vsel %vm400_vm0, %v7148_v51, %v7156_v55  ;;  %v402_v14 = vsel %vm400_vm0, %v7150_v52, %v7158_v56  ;;  %v403_v24 = vsel %vm400_vm0, %v7158_v56, %v7148_v51 }
 0x10b   : > { %814 = vrot.lane.b32.xlu0 %v793_v57, %s6879_s20  ;;  %812 = vrot.lane.b32.xlu1 %v792_v58, %s6879_s20 }
 0x10d   : > { %v7164_v59 = vpop.permute.xlu0 %446  ;;  %v7166_v60 = vpop.permute.xlu1 %384 }
 0x10f   : > { %818 = vrot.lane.b32.xlu0 %v795_v61, %s6879_s20  ;;  %816 = vrot.lane.b32.xlu1 %v794_v62, %s6879_s20 }
 0x111   : > { %v7172_v63 = vpop.permute.xlu0 %450  ;;  %v7174_v0 = vpop.permute.xlu1 %394 }
 0x115   : > { %v7176_v1 = vpop.permute.xlu0 %396  ;;  %v7178_v2 = vpop.permute.xlu1 %448 }
 0x116   : > { %v406_v51 = vsel %vm400_vm0, %v7174_v0, %v7176_v1  ;;  %v462_v56 = vsel %vm460_vm1, %v7164_v59, %v7178_v2 }
 0x117   : > { %v421_v44 = vadd.f32 %v406_v51, %v353_v16 }
 0x119   : > { %v7180_v3 = vpop.permute.xlu0 %452  ;;  %v7182_v4 = vpop.permute.xlu1 %444 }
 0x11d   : > { %v7184_v5 = vpop.permute.xlu0 %506  ;;  %v7186_v6 = vpop.permute.xlu1 %398 }
 0x121   : > { %v7188_v7 = vpop.permute.xlu0 %510  ;;  %v7190_v8 = vpop.permute.xlu1 %454 }
 0x125   : > { %v7192_v9 = vpop.permute.xlu0 %456  ;;  %v7194_v10 = vpop.permute.xlu1 %508 }
 0x129   : > { %v7196_v11 = vpop.permute.xlu0 %512  ;;  %v7198_v15 = vpop.permute.xlu1 %504 }
 0x12d   : > { %v7200_v20 = vpop.permute.xlu0 %566  ;;  %v7202_v22 = vpop.permute.xlu1 %458 }
 0x131   : > { %v7204_v23 = vpop.permute.xlu0 %570  ;;  %v7206_v26 = vpop.permute.xlu1 %514 }
 0x135   : > { %v7208_v27 = vpop.permute.xlu0 %516  ;;  %v7210_v28 = vpop.permute.xlu1 %568 }
 0x139   : > { %v7212_v31 = vpop.permute.xlu0 %572  ;;  %v7214_v32 = vpop.permute.xlu1 %564 }
 0x13d   : > { %v7216_v35 = vpop.permute.xlu0 %626  ;;  %v7218_v36 = vpop.permute.xlu1 %518 }
 0x141   : > { %v7220_v38 = vpop.permute.xlu0 %630  ;;  %v7222_v39 = vpop.permute.xlu1 %574 }
 0x145   : > { %v7224_v41 = vpop.permute.xlu0 %576  ;;  %v7226_v42 = vpop.permute.xlu1 %628 }
 0x149   : > { %v7228_v43 = vpop.permute.xlu0 %632  ;;  %v7230_v45 = vpop.permute.xlu1 %624 }
 0x14d   : > { %v7232_v46 = vpop.permute.xlu0 %686  ;;  %v7234_v49 = vpop.permute.xlu1 %578 }
 0x151   : > { %v7236_v50 = vpop.permute.xlu0 %690  ;;  %v7238_v53 = vpop.permute.xlu1 %634 }
 0x155   : > { %v7240_v54 = vpop.permute.xlu0 %636  ;;  %v7242_v57 = vpop.permute.xlu1 %688 }
 0x156   : > { %8554 = vst [vmem:[#allocation7_spill] sm:$0xff] %v7240_v54  ;;  %v417_v54 = vadd.f32 %v402_v14, %v349_v18  ;;  %v464_v14 = vsel %vm460_vm1, %v7172_v63, %v7180_v3  ;;  %v461_v18 = vsel %vm460_vm1, %v7182_v4, %v7164_v59  ;;  %v523_v4 = vsel %vm520_vm2, %v7194_v10, %v7188_v7 }
 0x159   : > { %v7244_v58 = vpop.permute.xlu0 %692  ;;  %v7246_v61 = vpop.permute.xlu1 %684 }
 0x15a   : > { %8555 = vst [vmem:[#allocation8_spill] sm:$0xff] %v7244_v58  ;;  %v405_v58 = vsel %vm400_vm0, %v7156_v55, %v7174_v0  ;;  %v463_v0 = vsel %vm460_vm1, %v7178_v2, %v7172_v63  ;;  %v465_v2 = vsel %vm460_vm1, %v7180_v3, %v7190_v8  ;;  %v466_v63 = vsel %vm460_vm1, %v7190_v8, %v7192_v9 }
 0x15b   : > { %v524_v3 = vsel %vm520_vm2, %v7188_v7, %v7196_v11  ;;  %v521_v8 = vsel %vm520_vm2, %v7198_v15, %v7184_v5  ;;  %v467_v7 = vsel %vm460_vm1, %v7192_v9, %v7202_v22  ;;  %v642_v15 = vsel %vm640_vm4, %v7216_v35, %v7226_v42 }
 0x15c   : > { %v584_v9 = vsel %vm580_vm3, %v7204_v23, %v7212_v31 }
 0x15d   : > { %v7248_v62 = vpop.permute.xlu0 %746  ;;  %v7250_v34 = vpop.permute.xlu1 %638 }
 0x15e   : > { %8556 = vst [vmem:[#allocation9_spill] sm:$0xff] %v7250_v34  ;;  %v401_v34 = vsel %vm400_vm0, %v7166_v60, %v7150_v52  ;;  %v8562_v52 = vsub.s32 2, %v6983_v12  ;;  %v418_v60 = vadd.f32 %v403_v24, %v350_v40  ;;  %v477_v12 = vadd.f32 %v462_v56, %v417_v54 }
 0x15f   : > { %v407_v40 = vsel %vm400_vm0, %v7176_v1, %v7186_v6  ;;  %v423_v1 = vadd.f32 %v7186_v6, %v355_v17  ;;  %v582_v54 = vsel %vm580_vm3, %v7200_v20, %v7210_v28  ;;  %v481_v24 = vadd.f32 %v466_v63, %v421_v44 }
 0x160   : > { %v7311_v55 = vrot.slane %v7263_v19, %v8562_v52 }
 0x161   : > { %v7282_v33 = vpop.permute.xlu0 %750  ;;  %v7284_v37 = vpop.permute.xlu1 %694 }
 0x162   : > { %8557 = vst [vmem:[#allocation10_spill] sm:$0xff] %v7284_v37  ;;  %v419_v37 = vadd.f32 %v404_v29, %v351_v30  ;;  %v416_v30 = vadd.f32 %v401_v34, %v348_v13  ;;  %v420_v29 = vadd.f32 %v405_v58, %v352_v21  ;;  %v522_v13 = vsel %vm520_vm2, %v7184_v5, %v7194_v10 }
 0x163   : > { %v478_v21 = vadd.f32 %v463_v0, %v418_v60  ;;  %v422_v58 = vadd.f32 %v407_v40, %v354_v25  ;;  %v525_v5 = vsel %vm520_vm2, %v7196_v11, %v7206_v26  ;;  %v583_v60 = vsel %vm580_vm3, %v7210_v28, %v7204_v23 }
 0x164   : > { %v479_v34 = vadd.f32 %v464_v14, %v419_v37  ;;  %v476_v59 = vadd.f32 %v461_v18, %v416_v30  ;;  %v480_v16 = vadd.f32 %v465_v2, %v420_v29  ;;  %v537_v37 = vadd.f32 %v522_v13, %v477_v12 }
 0x165   : > { %v745_v48 = vpop.permute.xlu0 %744  ;;  %v749_v52 = vpop.permute.xlu1 %748  ;;  %v538_v6 = vadd.f32 %v523_v4, %v478_v21  ;;  %v526_v12 = vsel %vm520_vm2, %v7206_v26, %v7208_v27  ;;  %v581_v11 = vsel %vm580_vm3, %v7214_v32, %v7200_v20  ;;  %v702_v0 = vsel %vm700_vm5, %v7232_v46, %v7242_v57 }
 0x166   : > { %v539_v25 = vadd.f32 %v524_v3, %v479_v34  ;;  %v536_v17 = vadd.f32 %v521_v8, %v476_v59  ;;  %v597_v56 = vadd.f32 %v582_v54, %v537_v37  ;;  %v482_v14 = vadd.f32 %v467_v7, %v422_v58 }
 0x167   : > { %v483_v26 = vadd.f32 %v7202_v22, %v423_v1  ;;  %v540_v18 = vadd.f32 %v525_v5, %v480_v16  ;;  %v541_v44 = vadd.f32 %v526_v12, %v481_v24  ;;  %v643_v23 = vsel %vm640_vm4, %v7226_v42, %v7220_v38 }
 0x168   : > { %v657_v30 = vadd.f32 %v642_v15, %v597_v56  ;;  %v641_v20 = vsel %vm640_vm4, %v7230_v45, %v7216_v35  ;;  %v762_v32 = vsel %vm760_vm6, %v7248_v62, %v749_v52  ;;  %v598_v40 = vadd.f32 %v583_v60, %v538_v6 }
 0x169   : > { %v7347_v10 = vpop.permute.xlu0 %698  ;;  %v7349_v51 = vpop.permute.xlu1 %696  ;;  %v599_v2 = vadd.f32 %v584_v9, %v539_v25  ;;  %v596_v22 = vadd.f32 %v581_v11, %v536_v17  ;;  %v527_v13 = vsel %vm520_vm2, %v7208_v27, %v7218_v36  ;;  %v585_v21 = vsel %vm580_vm3, %v7212_v31, %v7222_v39  ;;  %v8563_v17 = vld [vmem:[#allocation7_spill] sm:$0xff]  ;;  %v8564_v11 = vld [vmem:[#allocation8_spill] sm:$0xff] }
 0x16a   : > { %v717_v63 = vadd.f32 %v702_v0, %v657_v30  ;;  %v703_v42 = vsel %vm700_vm5, %v7242_v57, %v7236_v50  ;;  %v701_v35 = vsel %vm700_vm5, %v7246_v61, %v7232_v46  ;;  %v586_v45 = vsel %vm580_vm3, %v7222_v39, %v7224_v41  ;;  %v8567_v30 = vld [vmem:[#allocation11_spill] sm:$0xff] }
 0x16b   : > { %v658_v34 = vadd.f32 %v643_v23, %v598_v40  ;;  %v656_v59 = vadd.f32 %v641_v20, %v596_v22  ;;  %v543_v3 = vadd.f32 %v7218_v36, %v483_v26  ;;  %v761_v31 = vsel %vm760_vm6, %v745_v48, %v7248_v62  ;;  %v8566_v26 = vld [vmem:[#allocation9_spill] sm:$0xff] }
 0x16c   : > { %v777_v4 = vadd.f32 %v762_v32, %v717_v63  ;;  %v763_v57 = vsel %vm760_vm6, %v749_v52, %v7282_v33  ;;  %v644_v46 = vsel %vm640_vm4, %v7220_v38, %v7228_v43  ;;  %v542_v58 = vadd.f32 %v527_v13, %v482_v14  ;;  %v8565_v14 = vld [vmem:[#allocation10_spill] sm:$0xff] }
 0x16d   : > { %v7376_v29 = vpop.permute.xlu0 %754  ;;  %v753_v28 = vpop.permute.xlu1 %752  ;;  %v718_v39 = vadd.f32 %v703_v42, %v658_v34  ;;  %v716_v61 = vadd.f32 %v701_v35, %v656_v59  ;;  %v600_v16 = vadd.f32 %v585_v21, %v540_v18  ;;  %v601_v24 = vadd.f32 %v586_v45, %v541_v44 }
 0x16e   : > { %v587_v36 = vsel %vm580_vm3, %v7224_v41, %v7234_v49  ;;  %v645_v62 = vsel %vm640_vm4, %v7228_v43, %v7238_v53  ;;  %v659_v7 = vadd.f32 %v644_v46, %v599_v2  ;;  %v603_v5 = vadd.f32 %v7234_v49, %v543_v3 }
 0x16f   : > { %v776_v48 = vadd.f32 %v761_v31, %v716_v61  ;;  %v778_v52 = vadd.f32 %v763_v57, %v718_v39  ;;  %v646_v41 = vsel %vm640_vm4, %v7238_v53, %v8563_v17  ;;  %v602_v60 = vadd.f32 %v587_v36, %v542_v58  ;;  %v8569_v58 = vld [vmem:[#allocation6_spill] sm:$0xff] }
 0x170   : > { %v660_v9 = vadd.f32 %v645_v62, %v600_v16  ;;  %v704_v0 = vsel %vm700_vm5, %v7236_v50, %v8564_v11  ;;  %v705_v49 = vsel %vm700_vm5, %v8564_v11, %v8565_v14  ;;  %v647_v18 = vsel %vm640_vm4, %v8563_v17, %v8566_v26 }
 0x171   : > { %v809_v27 = vpop.permute.xlu0 %808  ;;  %v807_v1 = vpop.permute.xlu1 %806  ;;  %v661_v50 = vadd.f32 %v646_v41, %v601_v24  ;;  %v663_v40 = vadd.f32 %v8566_v26, %v603_v5  ;;  %v764_v2 = vsel %vm760_vm6, %v7282_v33, %v753_v28  ;;  %v765_v22 = vsel %vm760_vm6, %v753_v28, %v7376_v29 }
 0x172   : > { %v822_v8 = vsel %vm820_vm7, %v807_v1, %v809_v27  ;;  %v719_v63 = vadd.f32 %v704_v0, %v659_v7  ;;  %v720_v13 = vadd.f32 %v705_v49, %v660_v9  ;;  %v662_v35 = vadd.f32 %v647_v18, %v602_v60 }
 0x173   : > { %v837_v54 = vadd.f32 %v822_v8, %v777_v4  ;;  %v723_v45 = vadd.f32 %v7347_v10, %v663_v40  ;;  %v706_v34 = vsel %vm700_vm5, %v8565_v14, %v7349_v51  ;;  %v707_v33 = vsel %vm700_vm5, %v7349_v51, %v7347_v10  ;;  %v8568_v4 = vld [vmem:[#allocation12_spill] sm:$0xff] }
 0x174   : > { %v779_v28 = vadd.f32 %v764_v2, %v719_v63  ;;  %v780_v59 = vadd.f32 %v765_v22, %v720_v13  ;;  %v721_v10 = vadd.f32 %v706_v34, %v661_v50  ;;  %v722_v51 = vadd.f32 %v707_v33, %v662_v35  ;;  %v3845_v35 = vld [vmem:[%s8533_s5] sm:$0xff] }
 0x175   : > { %v7417_v37 = vadd.f32 %v7140_v47, %v837_v54  ;;  %v805_v38 = vpop.permute.xlu0 %804  ;;  %v811_v6 = vpop.permute.xlu1 %810  ;;  %v8570_v16 = vsub.s32 3, %v8569_v58  ;;  %v8573_v11 = vsub.s32 5, %v8569_v58  ;;  %v8574_v14 = vsub.s32 6, %v8569_v58 }
 0x176   : > { %v821_v15 = vsel %vm820_vm7, %v805_v38, %v807_v1  ;;  %v823_v25 = vsel %vm820_vm7, %v809_v27, %v811_v6  ;;  %v6880_v63 = vmov 0.0  }
 0x177   : > { %v859_v43 = vmax.f32 %v7417_v37, 0.0  ;;  %v836_v12 = vadd.f32 %v821_v15, %v776_v48  ;;  %v838_v56 = vadd.f32 %v823_v25, %v778_v52  ;;  %v883_v24 = vrot.slane %v7263_v19, %v8570_v16  ;;  %1042 = vmatprep.mubr.f32.mxu0 %v6880_v63  ;;  %1113 = vmatprep.mubr.f32.mxu1 %v6880_v63 }
 0x178   : > { %v891_v0 = vrot.slane %v7263_v19, %v8573_v11  ;;  %v895_v49 = vrot.slane %v7263_v19, %v8574_v14 }
 0x179   : > { %v7436_v53 = vmul.f32 %v8567_v30, %v859_v43  ;;  %v7439_v44 = vadd.f32 %v7140_v47, %v836_v12  ;;  %v7442_v23 = vadd.f32 %v7140_v47, %v838_v56  ;;  %v759_v20 = vpop.permute.xlu0 %758  ;;  %v757_v32 = vpop.permute.xlu1 %756  ;;  %v8572_v56 = vsub.s32 7, %v8569_v58 }
 0x17a   : > { %v766_v57 = vsel %vm760_vm6, %v7376_v29, %v757_v32  ;;  %v767_v8 = vsel %vm760_vm6, %v757_v32, %v759_v20  ;;  %v8571_v29 = vsub.s32 4, %v8569_v58 }
 0x17b   : > { %v858_v21 = vmax.f32 %v7439_v44, 0.0  ;;  %v860_v42 = vmax.f32 %v7442_v23, 0.0  ;;  %945 = vrot.lane.b32.xlu1 %v7436_v53, %s6872_s26  ;;  %v781_v62 = vadd.f32 %v766_v57, %v721_v10  ;;  %v782_v48 = vadd.f32 %v767_v8, %v722_v51 }
 0x17c   : > { %v887_v36 = vrot.slane %v7263_v19, %v8571_v29  ;;  %v899_v60 = vrot.slane %v7263_v19, %v8572_v56  ;;  %v6560_v56 = vld [vmem:[%s8532_s4 + $0x10] sm:$0xff] }
 0x17d   : > { %v7461_v27 = vmul.f32 %v8568_v4, %v858_v21  ;;  %v7464_v1 = vmul.f32 %v7311_v55, %v860_v42  ;;  %v815_v3 = vpop.permute.xlu0 %814  ;;  %v813_v31 = vpop.permute.xlu1 %812  ;;  %v783_v55 = vadd.f32 %v759_v20, %v723_v45 }
 0x17e   : > { %v824_v46 = vsel %vm820_vm7, %v811_v6, %v813_v31  ;;  %v825_v39 = vsel %vm820_vm7, %v813_v31, %v815_v3 }
 0x17f   : > { %v839_v61 = vadd.f32 %v824_v46, %v779_v28  ;;  %v840_v54 = vadd.f32 %v825_v39, %v780_v59  ;;  %943 = vrot.lane.b32.xlu1 %v7461_v27, %s6872_s26 }
 0x181   : > { %v7480_v52 = vadd.f32 %v7140_v47, %v839_v61  ;;  %v7483_v38 = vadd.f32 %v7140_v47, %v840_v54  ;;  %v819_v6 = vpop.permute.xlu0 %818  ;;  %v817_v7 = vpop.permute.xlu1 %816 }
 0x182   : > { %v843_v5 = vadd.f32 %v819_v6, %v783_v55  ;;  %v826_v15 = vsel %vm820_vm7, %v815_v3, %v817_v7  ;;  %v827_v25 = vsel %vm820_vm7, %v817_v7, %v819_v6 }
 0x183   : > { %v861_v17 = vmax.f32 %v7480_v52, 0.0  ;;  %v862_v41 = vmax.f32 %v7483_v38, 0.0  ;;  %v841_v43 = vadd.f32 %v826_v15, %v781_v62  ;;  %v842_v12 = vadd.f32 %v827_v25, %v782_v48 }
 0x184   : > { %v7493_v9 = vadd.f32 %v7140_v47, %v843_v5  ;;  %v924_v5 = vld [vmem:[%s8532_s4] sm:$0xff] }
 0x185   : > { %v7501_v26 = vmul.f32 %v883_v24, %v861_v17  ;;  %v7503_v18 = vmul.f32 %v887_v36, %v862_v41  ;;  %v7506_v30 = vadd.f32 %v7140_v47, %v841_v43  ;;  %v7509_v20 = vadd.f32 %v7140_v47, %v842_v12 }
 0x186   : > { %v865_v32 = vmax.f32 %v7493_v9, 0.0 }
 0x187   : > { %v863_v50 = vmax.f32 %v7506_v30, 0.0  ;;  %v864_v40 = vmax.f32 %v7509_v20, 0.0  ;;  %951 = vrot.lane.b32.xlu1 %v7503_v18, %s6872_s26 }
 0x188   : > { %v915_v19 = vmul.f32 %v899_v60, %v865_v32  ;;  %v6565_v32 = vld [vmem:[%s8532_s4 + $0x18] sm:$0xff] }
 0x189   : > { %v7516_v2 = vmul.f32 %v891_v0, %v863_v50  ;;  %v7518_v22 = vmul.f32 %v895_v49, %v864_v40 }
 0x18a   : > { %923 = vst.msk [vmem:[#allocation2 + $0x38] sm:$0xff] %vm820_vm7, %v915_v19 }
 0x18b   : > { %955 = vrot.lane.b32.xlu1 %v7518_v22, %s6872_s26 }
 0x18f   : > { %1553 = vrot.lane.b32.xlu1 %v7436_v53, %s6873_s10 }
 0x191   : > { %v7525_v47 = vld [vmem:[#allocation2 + $0x38] sm:$0xff] }
 0x192   : > { %957 = vrot.lane.b32.xlu0 %v7525_v47, %s6872_s26 }
 0x193   : > { %1551 = vrot.lane.b32.xlu1 %v7461_v27, %s6873_s10 }
 0x196   : > { %1565 = vrot.lane.b32.xlu0 %v7525_v47, %s6873_s10 }
 0x197   : > { %1559 = vrot.lane.b32.xlu1 %v7503_v18, %s6873_s10 }
 0x19a   : > { %1893 = vrot.lane.b32.xlu0 %v7525_v47, %s6874_s12 }
 0x19b   : > { %1563 = vrot.lane.b32.xlu1 %v7518_v22, %s6873_s10 }
 0x19e   : > { %2221 = vrot.lane.b32.xlu0 %v7525_v47, %s6875_s13 }
 0x19f   : > { %1881 = vrot.lane.b32.xlu1 %v7436_v53, %s6874_s12 }
 0x1a2   : > { %2549 = vrot.lane.b32.xlu0 %v7525_v47, %s6876_s17 }
 0x1a3   : > { %1879 = vrot.lane.b32.xlu1 %v7461_v27, %s6874_s12 }
 0x1a6   : > { %2877 = vrot.lane.b32.xlu0 %v7525_v47, %s6877_s18 }
 0x1a7   : > { %1887 = vrot.lane.b32.xlu1 %v7503_v18, %s6874_s12 }
 0x1aa   : > { %3205 = vrot.lane.b32.xlu0 %v7525_v47, %s6878_s19 }
 0x1ab   : > { %1891 = vrot.lane.b32.xlu1 %v7518_v22, %s6874_s12 }
 0x1ae   : > { %947 = vrot.lane.b32.xlu0 %v7464_v1, %s6872_s26 }
 0x1af   : > { %2209 = vrot.lane.b32.xlu1 %v7436_v53, %s6875_s13 }
 0x1b2   : > { %949 = vrot.lane.b32.xlu0 %v7501_v26, %s6872_s26 }
 0x1b3   : > { %2207 = vrot.lane.b32.xlu1 %v7461_v27, %s6875_s13 }
 0x1b6   : > { %953 = vrot.lane.b32.xlu0 %v7516_v2, %s6872_s26 }
 0x1b7   : > { %2215 = vrot.lane.b32.xlu1 %v7503_v18, %s6875_s13 }
 0x1ba   : > { %1555 = vrot.lane.b32.xlu0 %v7464_v1, %s6873_s10 }
 0x1bb   : > { %2219 = vrot.lane.b32.xlu1 %v7518_v22, %s6875_s13 }
 0x1be   : > { %1557 = vrot.lane.b32.xlu0 %v7501_v26, %s6873_s10 }
 0x1bf   : > { %2537 = vrot.lane.b32.xlu1 %v7436_v53, %s6876_s17 }
 0x1c2   : > { %1561 = vrot.lane.b32.xlu0 %v7516_v2, %s6873_s10 }
 0x1c3   : > { %2535 = vrot.lane.b32.xlu1 %v7461_v27, %s6876_s17 }
 0x1c6   : > { %1883 = vrot.lane.b32.xlu0 %v7464_v1, %s6874_s12 }
 0x1c7   : > { %2543 = vrot.lane.b32.xlu1 %v7503_v18, %s6876_s17 }
 0x1ca   : > { %1885 = vrot.lane.b32.xlu0 %v7501_v26, %s6874_s12 }
 0x1cb   : > { %2547 = vrot.lane.b32.xlu1 %v7518_v22, %s6876_s17 }
 0x1ce   : > { %1889 = vrot.lane.b32.xlu0 %v7516_v2, %s6874_s12  ;;  %s294_s12 = sand.u32 1, %s6853_s28  }
 0x1cf   : > { %2865 = vrot.lane.b32.xlu1 %v7436_v53, %s6877_s18  ;;  %s6479_s22 = scalar_lea.sflag [#allocation4], %s294_s12 }
 0x1d2   : > { %2211 = vrot.lane.b32.xlu0 %v7464_v1, %s6875_s13 }
 0x1d3   : > { %2863 = vrot.lane.b32.xlu1 %v7461_v27, %s6877_s18 }
 0x1d6   : > { %2213 = vrot.lane.b32.xlu0 %v7501_v26, %s6875_s13 }
 0x1d7   : > { %2871 = vrot.lane.b32.xlu1 %v7503_v18, %s6877_s18 }
 0x1da   : > { %2217 = vrot.lane.b32.xlu0 %v7516_v2, %s6875_s13 }
 0x1db   : > { %2875 = vrot.lane.b32.xlu1 %v7518_v22, %s6877_s18 }
 0x1de   : > { %2539 = vrot.lane.b32.xlu0 %v7464_v1, %s6876_s17 }
 0x1df   : > { %3193 = vrot.lane.b32.xlu1 %v7436_v53, %s6878_s19 }
 0x1e2   : > { %2541 = vrot.lane.b32.xlu0 %v7501_v26, %s6876_s17 }
 0x1e3   : > { %3191 = vrot.lane.b32.xlu1 %v7461_v27, %s6878_s19 }
 0x1e6   : > { %2545 = vrot.lane.b32.xlu0 %v7516_v2, %s6876_s17  ;;  %s295_s17 = scalar_lea.vmem [#allocation3], %s294_s12 }
 0x1e7   : > { %3199 = vrot.lane.b32.xlu1 %v7503_v18, %s6878_s19 }
 0x1ea   : > { %2867 = vrot.lane.b32.xlu0 %v7464_v1, %s6877_s18 }
 0x1eb   : > { %3203 = vrot.lane.b32.xlu1 %v7518_v22, %s6878_s19 }
 0x1ed   : > { %v946_v13 = vpop.permute.xlu1 %945 }
 0x1ee   : > { %2869 = vrot.lane.b32.xlu0 %v7501_v26, %s6877_s18 }
 0x1ef   : > { %3521 = vrot.lane.b32.xlu1 %v7436_v53, %s6879_s20 }
 0x1f1   : > { %v944_v21 = vpop.permute.xlu1 %943 }
 0x1f2   : > { %2873 = vrot.lane.b32.xlu0 %v7516_v2, %s6877_s18  ;;  %v959_v58 = vsel %vm400_vm0, %v944_v21, %v946_v13  ;;  %s6491_s18 = sshll.u32 %s295_s17, 4  ;;  %s6492_s18 = int_to_ptr.vmem [resolvable:$true] %s6491_s18 }
 0x1f3   : > { %3519 = vrot.lane.b32.xlu1 %v7461_v27, %s6879_s20  ;;  %s6801_s23 = scalar_lea.vmem %s6492_s18, 16 }
 0x1f4   : > { %p6802_p11 = scmp.ne.s32.totalorder %s6492_s18, %s6801_s23 }
 0x1f6   : > { %3195 = vrot.lane.b32.xlu0 %v7464_v1, %s6878_s19  ;;  %p6803_p12 = pnand %p6802_p11, %p6965_p5 }
 0x1f7   : > { %3527 = vrot.lane.b32.xlu1 %v7503_v18, %s6879_s20 }
 0x1f8   : > { %p6804_p13 = pneg %p6803_p12 }
 0x1f9   : > { %v952_v42 = vpop.permute.xlu1 %951 }
 0x1fa   : > { %3197 = vrot.lane.b32.xlu0 %v7501_v26, %s6878_s19 }
 0x1fb   : > { %3531 = vrot.lane.b32.xlu1 %v7518_v22, %s6879_s20 }
 0x1fd   : > { %v956_v45 = vpop.permute.xlu1 %955 }
 0x1fe   : > { %3201 = vrot.lane.b32.xlu0 %v7516_v2, %s6878_s19 }
 0x1ff   : > { %3848 = vperm.xlu1 %6800, %v3845_v35  }
 0x201   : > { %v7642_v34 = vpop.permute.xlu1 %1553 }
 0x202   : > { %3523 = vrot.lane.b32.xlu0 %v7464_v1, %s6879_s20 }
 0x203   : > { %3879 = vrot.lane.b32.xlu1 %v7442_v23, %s6875_s13 }
 0x204   : > { %v958_v33 = vpop.permute.xlu0 %957 }
 0x205   : > { %v7648_v28 = vpop.permute.xlu1 %1551  ;;  %v965_v62 = vsel %vm400_vm0, %v956_v45, %v958_v33 }
 0x206   : > { %3525 = vrot.lane.b32.xlu0 %v7501_v26, %s6879_s20  ;;  %v1567_v17 = vsel %vm460_vm1, %v7648_v28, %v7642_v34 }
 0x207   : > { %3881 = vrot.lane.b32.xlu1 %v7480_v52, %s6875_s13 }
 0x208   : > { %v7654_v59 = vpop.permute.xlu0 %1565 }
 0x209   : > { %v7656_v4 = vpop.permute.xlu1 %1559 }
 0x20a   : > { %3529 = vrot.lane.b32.xlu0 %v7516_v2, %s6879_s20 }
 0x20b   : > { %3885 = vrot.lane.b32.xlu1 %v7506_v30, %s6875_s13 }
 0x20c   : > { %v7662_v23 = vpop.permute.xlu0 %1893 }
 0x20d   : > { %v7664_v3 = vpop.permute.xlu1 %1563 }
 0x20e   : > { %3533 = vrot.lane.b32.xlu0 %v7525_v47, %s6879_s20  ;;  %v1573_v0 = vsel %vm460_vm1, %v7664_v3, %v7654_v59 }
 0x20f   : > { %3889 = vrot.lane.b32.xlu1 %v7493_v9, %s6875_s13 }
 0x210   : > { %v7670_v31 = vpop.permute.xlu0 %2221 }
 0x211   : > { %v7672_v57 = vpop.permute.xlu1 %1881 }
 0x212   : > { %3877 = vrot.lane.b32.xlu0 %v7417_v37, %s6875_s13 }
 0x214   : > { %v7676_v8 = vpop.permute.xlu0 %2549 }
 0x215   : > { %v7678_v46 = vpop.permute.xlu1 %1879 }
 0x216   : > { %3875 = vrot.lane.b32.xlu0 %v7439_v44, %s6875_s13  ;;  %v6551_v44 = vld [vmem:[%s8532_s4 + $0x8] sm:$0xff] }
 0x218   : > { %v7682_v39 = vpop.permute.xlu0 %2877 }
 0x219   : > { %v7684_v10 = vpop.permute.xlu1 %1887 }
 0x21a   : > { %3883 = vrot.lane.b32.xlu0 %v7483_v38, %s6875_s13 }
 0x21c   : > { %v7688_v51 = vpop.permute.xlu0 %3205 }
 0x21d   : > { %v7690_v61 = vpop.permute.xlu1 %1891 }
 0x21e   : > { %3887 = vrot.lane.b32.xlu0 %v7509_v20, %s6875_s13  ;;  %v1901_v19 = vsel %vm520_vm2, %v7690_v61, %v7662_v23  ;;  %s6731_s13 = sshll.u32 %s6948_s9, 4  ;;  %s6881_s9 = smov [#allocation3]  }
 0x21f   : > { %s6489_s21 = scalar_lea.hbm %s8536_s8, %s6731_s13  ;;  %s6805_s24 = sshll.u32 %s6881_s9, 4  ;;  %s6806_s24 = int_to_ptr.vmem [resolvable:$false] %s6805_s24 }
 0x220   : > { %v948_v37 = vpop.permute.xlu0 %947  ;;  %s6807_s25 = scalar_lea.vmem %s6806_s24, 32  ;;  %p6808_p0 = scmp.lt.s32.totalorder %s6492_s18, %s6806_s24 }
 0x221   : > { %v960_v54 = vsel %vm400_vm0, %v946_v13, %v948_v37  ;;  %v7698_v55 = vpop.permute.xlu1 %2209  ;;  %p6809_p1 = scmp.lt.s32.totalorder %s6807_s25, %s6801_s23 }
 0x222   : > { %1008 = vmatprep.subr.mxu0 %v960_v54 }
 0x223   : > { %1009 = vmatpush1.msra.mxu0 %v959_v58  ;;  %p6810_p2 = por %p6809_p1, %p6808_p0 }
 0x224   : > { %v950_v16 = vpop.permute.xlu0 %949  ;;  %6552 = vmatmul.mubr.msk.f32.vlgmr.msra.gmra.mxu0 %vm974_vm8, %v6551_v44 }
 0x225   : > { %v962_v24 = vsel %vm400_vm0, %v950_v16, %v952_v42  ;;  %v961_v29 = vsel %vm400_vm0, %v948_v37, %v950_v16  ;;  %1184 = vmatprep.mubr.f32.mxu0 %v6880_v63  ;;  %v7705_v36 = vpop.permute.xlu1 %2207  ;;  %p6811_p3 = pnand %p6810_p2, %p6804_p13 }
 0x226   : > { %1079 = vmatprep.subr.mxu1 %v962_v24 }
 0x227   : > { %1080 = vmatpush1.msra.mxu1 %v961_v29 }
 0x228   : > { %v954_v48 = vpop.permute.xlu0 %953  ;;  %6553 = vmatmul.mubr.msk.f32.vlgmr.msra.gmra.mxu1 %vm974_vm8, %v6551_v44  ;;  %1221 = vmatprep.subr.mxu1 %v958_v33 }
 0x229   : > { %v963_v52 = vsel %vm400_vm0, %v952_v42, %v954_v48  ;;  %1222 = vmatpush1.msra.mxu1 %v965_v62  ;;  %v964_v38 = vsel %vm400_vm0, %v954_v48, %v956_v45  ;;  %1255 = vmatprep.mubr.f32.mxu1 %v6880_v63  ;;  %v7712_v6 = vpop.permute.xlu1 %2215  ;;  %v6570_v42 = vld [vmem:[%s8532_s4 + $0x20] sm:$0xff]  ;;  %v2223_v45 = vsel %vm580_vm3, %v7705_v36, %v7698_v55 }
 0x22a   : > { %1150 = vmatprep.subr.mxu0 %v964_v38  ;;  %1366 = vmatprep.subr.mxu1 %v7501_v26  ;;  %v1895_v26 = vsel %vm520_vm2, %v7678_v46, %v7672_v57 }
 0x22b   : > { %1151 = vmatpush1.msra.mxu0 %v963_v52  ;;  %v6580_v52 = vld [vmem:[%s8532_s4 + $0x30] sm:$0xff] }
 0x22c   : > { %v1556_v7 = vpop.permute.xlu0 %1555  ;;  %6554 = vmatmul.mubr.msk.f32.vlgmr.msra.gmra.mxu0 %vm974_vm8, %v6551_v44  ;;  %6555 = vmatmul.mubr.msk.f32.vlgmr.msra.gmra.mxu1 %vm974_vm8, %v6551_v44 }
 0x22d   : > { %1295 = vmatprep.subr.mxu0 %v7436_v53  ;;  %1367 = vmatpush1.msra.mxu1 %v7464_v1  ;;  %v7722_v15 = vpop.permute.xlu1 %2219  ;;  %v1568_v53 = vsel %vm460_vm1, %v7642_v34, %v1556_v7 }
 0x22e   : > { %1296 = vmatpush1.msra.mxu0 %v7461_v27  ;;  %1508 = vmatprep.subr.mxu1 %v7525_v47 }
 0x22f   : > { %1437 = vmatprep.subr.mxu0 %v7516_v2  ;;  %1329 = vmatprep.mubr.f32.mxu0 %v6880_v63 }
 0x230   : > { %1400 = vmatprep.mubr.f32.mxu1 %v6880_v63  ;;  %v1558_v25 = vpop.permute.xlu0 %1557  ;;  %6556 = vmatmul.mubr.msk.f32.vlgmr.msra.gmra.mxu0 %vm974_vm8, %v924_v5 }
 0x231   : > { %6557 = vmatmul.mubr.msk.f32.vlgmr.msra.gmra.mxu1 %vm974_vm8, %v924_v5  ;;  %1438 = vmatpush1.msra.mxu0 %v7503_v18  ;;  %v1570_v27 = vsel %vm460_vm1, %v1558_v25, %v7656_v4  ;;  %v7736_v1 = vpop.permute.xlu1 %2537  ;;  %v1569_v43 = vsel %vm460_vm1, %v1556_v7, %v1558_v25 }
 0x232   : > { %1509 = vmatpush1.msra.mxu1 %v7518_v22  ;;  %1615 = vmatprep.subr.mxu0 %v1568_v53 }
 0x233   : > { %1686 = vmatprep.subr.mxu1 %v1570_v27  ;;  %1471 = vmatprep.mubr.f32.mxu0 %v6880_v63 }
 0x234   : > { %1542 = vmatprep.mubr.f32.mxu1 %v6880_v63  ;;  %v1562_v41 = vpop.permute.xlu0 %1561  ;;  %6558 = vmatmul.mubr.msk.f32.vlgmr.msra.gmra.mxu0 %vm974_vm8, %v924_v5 }
 0x235   : > { %6559 = vmatmul.mubr.msk.f32.vlgmr.msra.gmra.mxu1 %vm974_vm8, %v924_v5  ;;  %1616 = vmatpush1.msra.mxu0 %v1567_v17  ;;  %v1572_v12 = vsel %vm460_vm1, %v1562_v41, %v7664_v3  ;;  %v7752_v60 = vpop.permute.xlu1 %2535  ;;  %v1571_v9 = vsel %vm460_vm1, %v7656_v4, %v1562_v41  ;;  %v2229_v4 = vsel %vm580_vm3, %v7722_v15, %v7670_v31 }
 0x236   : > { %1687 = vmatpush1.msra.mxu1 %v1569_v43  ;;  %1757 = vmatprep.subr.mxu0 %v1572_v12  ;;  %v2551_v37 = vsel %vm640_vm4, %v7752_v60, %v7736_v1 }
 0x237   : > { %1828 = vmatprep.subr.mxu1 %v7654_v59  ;;  %1649 = vmatprep.mubr.f32.mxu0 %v6880_v63 }
 0x238   : > { %1720 = vmatprep.mubr.f32.mxu1 %v6880_v63  ;;  %v1884_v11 = vpop.permute.xlu0 %1883  ;;  %6561 = vmatmul.mubr.msk.f32.vlgmr.msra.gmra.mxu0 %vm974_vm8, %v6560_v56 }
 0x239   : > { %6562 = vmatmul.mubr.msk.f32.vlgmr.msra.gmra.mxu1 %vm974_vm8, %v6560_v56  ;;  %1758 = vmatpush1.msra.mxu0 %v1571_v9  ;;  %v1896_v14 = vsel %vm520_vm2, %v7672_v57, %v1884_v11  ;;  %v7766_v49 = vpop.permute.xlu1 %2543 }
 0x23a   : > { %1829 = vmatpush1.msra.mxu1 %v1573_v0  ;;  %1943 = vmatprep.subr.mxu0 %v1896_v14 }
 0x23b   : > { %1791 = vmatprep.mubr.f32.mxu0 %v6880_v63  ;;  %1862 = vmatprep.mubr.f32.mxu1 %v6880_v63 }
 0x23c   : > { %v1886_v18 = vpop.permute.xlu0 %1885  ;;  %6563 = vmatmul.mubr.msk.f32.vlgmr.msra.gmra.mxu0 %vm974_vm8, %v6560_v56 }
 0x23d   : > { %v1897_v30 = vsel %vm520_vm2, %v1884_v11, %v1886_v18  ;;  %1944 = vmatpush1.msra.mxu0 %v1895_v26  ;;  %6564 = vmatmul.mubr.msk.f32.vlgmr.msra.gmra.mxu1 %vm974_vm8, %v6560_v56  ;;  %v1898_v20 = vsel %vm520_vm2, %v1886_v18, %v7684_v10  ;;  %v7781_v50 = vpop.permute.xlu1 %2547 }
 0x23e   : > { %2014 = vmatprep.subr.mxu1 %v1898_v20  ;;  %1977 = vmatprep.mubr.f32.mxu0 %v6880_v63  ;;  %v2557_v16 = vsel %vm640_vm4, %v7781_v50, %v7676_v8 }
 0x23f   : > { %2015 = vmatpush1.msra.mxu1 %v1897_v30  ;;  %2048 = vmatprep.mubr.f32.mxu1 %v6880_v63 }
 0x240   : > { %v1890_v40 = vpop.permute.xlu0 %1889  ;;  %6566 = vmatmul.mubr.msk.f32.vlgmr.msra.gmra.mxu0 %vm974_vm8, %v6565_v32  ;;  %2156 = vmatprep.subr.mxu1 %v7662_v23 }
 0x241   : > { %v1899_v2 = vsel %vm520_vm2, %v7684_v10, %v1890_v40  ;;  %6567 = vmatmul.mubr.msk.f32.vlgmr.msra.gmra.mxu1 %vm974_vm8, %v6565_v32  ;;  %v1900_v22 = vsel %vm520_vm2, %v1890_v40, %v7690_v61  ;;  %2119 = vmatprep.mubr.f32.mxu0 %v6880_v63  ;;  %v7796_v47 = vpop.permute.xlu1 %2865  ;;  %v6575_v61 = vld [vmem:[%s8532_s4 + $0x28] sm:$0xff] }
 0x242   : > { %2157 = vmatpush1.msra.mxu1 %v1901_v19  ;;  %2085 = vmatprep.subr.mxu0 %v1900_v22 }
 0x243   : > { %2086 = vmatpush1.msra.mxu0 %v1899_v2  ;;  %2190 = vmatprep.mubr.f32.mxu1 %v6880_v63 }
 0x244   : > { %v2212_v13 = vpop.permute.xlu0 %2211  ;;  %6568 = vmatmul.mubr.msk.f32.vlgmr.msra.gmra.mxu0 %vm974_vm8, %v6565_v32 }
 0x245   : > { %6569 = vmatmul.mubr.msk.f32.vlgmr.msra.gmra.mxu1 %vm974_vm8, %v6565_v32  ;;  %v2224_v21 = vsel %vm580_vm3, %v7698_v55, %v2212_v13  ;;  %2305 = vmatprep.mubr.f32.mxu0 %v6880_v63  ;;  %v2864_v35 = vpop.permute.xlu1 %2863 }
 0x246   : > { %2271 = vmatprep.subr.mxu0 %v2224_v21  ;;  %2376 = vmatprep.mubr.f32.mxu1 %v6880_v63  ;;  %v2879_v38 = vsel %vm700_vm5, %v2864_v35, %v7796_v47 }
 0x247   : > { %2272 = vmatpush1.msra.mxu0 %v2223_v45  ;;  %v3924_v45 = vld [vmem:[%s8534_s6 + $0x48] sm:$0x3] }
 0x248   : > { %v2214_v34 = vpop.permute.xlu0 %2213  ;;  %6571 = vmatmul.mubr.msk.f32.vlgmr.msra.gmra.mxu0 %vm974_vm8, %v6570_v42 }
 0x249   : > { %v2225_v33 = vsel %vm580_vm3, %v2212_v13, %v2214_v34  ;;  %v2226_v28 = vsel %vm580_vm3, %v2214_v34, %v7712_v6  ;;  %2447 = vmatprep.mubr.f32.mxu0 %v6880_v63  ;;  %v7816_v59 = vpop.permute.xlu1 %2871  ;;  %v3916_v34 = vld [vmem:[%s8534_s6 + $0x8] sm:$0xff] }
 0x24a   : > { %2342 = vmatprep.subr.mxu1 %v2226_v28  ;;  %v3915_v28 = vld [vmem:[%s8534_s6] sm:$0xff] }
 0x24b   : > { %2343 = vmatpush1.msra.mxu1 %v2225_v33  ;;  %v3926_v33 = vld [vmem:[%s8534_s6 + $0x58] sm:$0x3] }
 0x24c   : > { %v2218_v23 = vpop.permute.xlu0 %2217  ;;  %6572 = vmatmul.mubr.msk.f32.vlgmr.msra.gmra.mxu1 %vm974_vm8, %v6570_v42  ;;  %2484 = vmatprep.subr.mxu1 %v7670_v31 }
 0x24d   : > { %v2227_v3 = vsel %vm580_vm3, %v7712_v6, %v2218_v23  ;;  %2485 = vmatpush1.msra.mxu1 %v2229_v4  ;;  %v2228_v57 = vsel %vm580_vm3, %v2218_v23, %v7722_v15  ;;  %2518 = vmatprep.mubr.f32.mxu1 %v6880_v63  ;;  %v2876_v46 = vpop.permute.xlu1 %2875  ;;  %v3918_v4 = vld [vmem:[%s8534_s6 + $0x18] sm:$0xff]  ;;  %v3928_v23 = vld [vmem:[%s8534_s6 + $0x68] sm:$0x3] }
 0x24e   : > { %2413 = vmatprep.subr.mxu0 %v2228_v57  ;;  %v2885_v25 = vsel %vm700_vm5, %v2876_v46, %v7682_v39  ;;  %v3930_v57 = vld [vmem:[%s8534_s6 + $0x78] sm:$0x3] }
 0x24f   : > { %2414 = vmatpush1.msra.mxu0 %v2227_v3  ;;  %v3917_v3 = vld [vmem:[%s8534_s6 + $0x10] sm:$0xff] }
 0x250   : > { %v2540_v10 = vpop.permute.xlu0 %2539  ;;  %6573 = vmatmul.mubr.msk.f32.vlgmr.msra.gmra.mxu0 %vm974_vm8, %v6570_v42  ;;  %6574 = vmatmul.mubr.msk.f32.vlgmr.msra.gmra.mxu1 %vm974_vm8, %v6570_v42 }
 0x251   : > { %v2552_v31 = vsel %vm640_vm4, %v7736_v1, %v2540_v10  ;;  %2633 = vmatprep.mubr.f32.mxu0 %v6880_v63  ;;  %2704 = vmatprep.mubr.f32.mxu1 %v6880_v63  ;;  %v3194_v54 = vpop.permute.xlu1 %3193 }
 0x252   : > { %2599 = vmatprep.subr.mxu0 %v2552_v31 }
 0x253   : > { %2600 = vmatpush1.msra.mxu0 %v2551_v37 }
 0x254   : > { %v2542_v44 = vpop.permute.xlu0 %2541  ;;  %6576 = vmatmul.mubr.msk.f32.vlgmr.msra.gmra.mxu0 %vm974_vm8, %v6575_v61 }
 0x255   : > { %v2553_v55 = vsel %vm640_vm4, %v2540_v10, %v2542_v44  ;;  %v2554_v58 = vsel %vm640_vm4, %v2542_v44, %v7766_v49  ;;  %2775 = vmatprep.mubr.f32.mxu0 %v6880_v63  ;;  %v3192_v29 = vpop.permute.xlu1 %3191 }
 0x256   : > { %2670 = vmatprep.subr.mxu1 %v2554_v58  ;;  %v3207_v12 = vsel %vm760_vm6, %v3192_v29, %v3194_v54 }
 0x257   : > { %2671 = vmatpush1.msra.mxu1 %v2553_v55 }
 0x258   : > { %v2546_v24 = vpop.permute.xlu0 %2545  ;;  %6577 = vmatmul.mubr.msk.f32.vlgmr.msra.gmra.mxu1 %vm974_vm8, %v6575_v61  ;;  %2812 = vmatprep.subr.mxu1 %v7676_v8 }
 0x259   : > { %v2555_v36 = vsel %vm640_vm4, %v7766_v49, %v2546_v24  ;;  %2813 = vmatpush1.msra.mxu1 %v2557_v16  ;;  %v2556_v62 = vsel %vm640_vm4, %v2546_v24, %v7781_v50  ;;  %2846 = vmatprep.mubr.f32.mxu1 %v6880_v63  ;;  %v3200_v6 = vpop.permute.xlu1 %3199 }
 0x25a   : > { %2741 = vmatprep.subr.mxu0 %v2556_v62 }
 0x25b   : > { %2742 = vmatpush1.msra.mxu0 %v2555_v36 }
 0x25c   : > { %v2868_v48 = vpop.permute.xlu0 %2867  ;;  %6578 = vmatmul.mubr.msk.f32.vlgmr.msra.gmra.mxu0 %vm974_vm8, %v6575_v61  ;;  %6579 = vmatmul.mubr.msk.f32.vlgmr.msra.gmra.mxu1 %vm974_vm8, %v6575_v61 }
 0x25d   : > { %v2880_v8 = vsel %vm700_vm5, %v7796_v47, %v2868_v48  ;;  %2961 = vmatprep.mubr.f32.mxu0 %v6880_v63  ;;  %3032 = vmatprep.mubr.f32.mxu1 %v6880_v63  ;;  %v3204_v27 = vpop.permute.xlu1 %3203 }
 0x25e   : > { %2927 = vmatprep.subr.mxu0 %v2880_v8  ;;  %v3213_v0 = vsel %vm760_vm6, %v3204_v27, %v7688_v51 }
 0x25f   : > { %2928 = vmatpush1.msra.mxu0 %v2879_v38 }
 0x260   : > { %v2870_v7 = vpop.permute.xlu0 %2869  ;;  %6581 = vmatmul.mubr.msk.f32.vlgmr.msra.gmra.mxu0 %vm974_vm8, %v6580_v52 }
 0x261   : > { %v2881_v5 = vsel %vm700_vm5, %v2868_v48, %v2870_v7  ;;  %v2882_v15 = vsel %vm700_vm5, %v2870_v7, %v7816_v59  ;;  %3103 = vmatprep.mubr.f32.mxu0 %v6880_v63  ;;  %v3522_v56 = vpop.permute.xlu1 %3521 }
 0x262   : > { %2998 = vmatprep.subr.mxu1 %v2882_v15 }
 0x263   : > { %2999 = vmatpush1.msra.mxu1 %v2881_v5 }
 0x264   : > { %v2874_v53 = vpop.permute.xlu0 %2873  ;;  %6582 = vmatmul.mubr.msk.f32.vlgmr.msra.gmra.mxu1 %vm974_vm8, %v6580_v52  ;;  %3140 = vmatprep.subr.mxu1 %v7682_v39  ;;  %v6585_v39 = vld [vmem:[%s8532_s4 + $0x38] sm:$0xff] }
 0x265   : > { %v2883_v1 = vsel %vm700_vm5, %v7816_v59, %v2874_v53  ;;  %3141 = vmatpush1.msra.mxu1 %v2885_v25  ;;  %v2884_v17 = vsel %vm700_vm5, %v2874_v53, %v2876_v46  ;;  %3174 = vmatprep.mubr.f32.mxu1 %v6880_v63  ;;  %v3520_v14 = vpop.permute.xlu1 %3519  ;;  %v3925_v59 = vld [vmem:[%s8534_s6 + $0x50] sm:$0x3] }
 0x266   : > { %3069 = vmatprep.subr.mxu0 %v2884_v17  ;;  %v3535_v32 = vsel %vm820_vm7, %v3520_v14, %v3522_v56 }
 0x267   : > { %3070 = vmatpush1.msra.mxu0 %v2883_v1 }
 0x268   : > { %v3196_v41 = vpop.permute.xlu0 %3195  ;;  %6583 = vmatmul.mubr.msk.f32.vlgmr.msra.gmra.mxu0 %vm974_vm8, %v6580_v52  ;;  %6584 = vmatmul.mubr.msk.f32.vlgmr.msra.gmra.mxu1 %vm974_vm8, %v6580_v52 }
 0x269   : > { %v3208_v43 = vsel %vm760_vm6, %v3194_v54, %v3196_v41  ;;  %3289 = vmatprep.mubr.f32.mxu0 %v6880_v63  ;;  %3360 = vmatprep.mubr.f32.mxu1 %v6880_v63  ;;  %v3528_v50 = vpop.permute.xlu1 %3527 }
 0x26a   : > { %3255 = vmatprep.subr.mxu0 %v3208_v43 }
 0x26b   : > { %3256 = vmatpush1.msra.mxu0 %v3207_v12 }
 0x26c   : > { %v3198_v60 = vpop.permute.xlu0 %3197  ;;  %6586 = vmatmul.mubr.msk.f32.vlgmr.msra.gmra.mxu0 %vm974_vm8, %v6585_v39 }
 0x26d   : > { %v3209_v9 = vsel %vm760_vm6, %v3196_v41, %v3198_v60  ;;  %v3210_v11 = vsel %vm760_vm6, %v3198_v60, %v3200_v6  ;;  %3431 = vmatprep.mubr.f32.mxu0 %v6880_v63  ;;  %v3532_v22 = vpop.permute.xlu1 %3531 }
 0x26e   : > { %3326 = vmatprep.subr.mxu1 %v3210_v11 }
 0x26f   : > { %3327 = vmatpush1.msra.mxu1 %v3209_v9 }
 0x270   : > { %v3202_v49 = vpop.permute.xlu0 %3201  ;;  %6587 = vmatmul.mubr.msk.f32.vlgmr.msra.gmra.mxu1 %vm974_vm8, %v6585_v39  ;;  %3468 = vmatprep.subr.mxu1 %v7688_v51  ;;  %v6590_v51 = vld [vmem:[%s8532_s4 + $0x40] sm:$0xff] }
 0x271   : > { %v3211_v26 = vsel %vm760_vm6, %v3200_v6, %v3202_v49  ;;  %3469 = vmatpush1.msra.mxu1 %v3213_v0  ;;  %v3212_v18 = vsel %vm760_vm6, %v3202_v49, %v3204_v27  ;;  %3502 = vmatprep.mubr.f32.mxu1 %v6880_v63 }
 0x272   : > { %3397 = vmatprep.subr.mxu0 %v3212_v18 }
 0x273   : > { %3398 = vmatpush1.msra.mxu0 %v3211_v26 }
 0x274   : > { %v3524_v30 = vpop.permute.xlu0 %3523  ;;  %6588 = vmatmul.mubr.msk.f32.vlgmr.msra.gmra.mxu0 %vm974_vm8, %v6585_v39  ;;  %6589 = vmatmul.mubr.msk.f32.vlgmr.msra.gmra.mxu1 %vm974_vm8, %v6585_v39 }
 0x275   : > { %v3536_v20 = vsel %vm820_vm7, %v3522_v56, %v3524_v30  ;;  %3617 = vmatprep.mubr.f32.mxu0 %v6880_v63  ;;  %3688 = vmatprep.mubr.f32.mxu1 %v6880_v63 }
 0x276   : > { %3583 = vmatprep.subr.mxu0 %v3536_v20 }
 0x277   : > { %3584 = vmatpush1.msra.mxu0 %v3535_v32 }
 0x278   : > { %v3526_v40 = vpop.permute.xlu0 %3525  ;;  %6591 = vmatmul.mubr.msk.f32.vlgmr.msra.gmra.mxu0 %vm974_vm8, %v6590_v51 }
 0x279   : > { %v3537_v19 = vsel %vm820_vm7, %v3524_v30, %v3526_v40  ;;  %v3538_v2 = vsel %vm820_vm7, %v3526_v40, %v3528_v50  ;;  %3759 = vmatprep.mubr.f32.mxu0 %v6880_v63 }
 0x27a   : > { %3654 = vmatprep.subr.mxu1 %v3538_v2 }
 0x27b   : > { %3655 = vmatpush1.msra.mxu1 %v3537_v19 }
 0x27c   : > { %v3530_v47 = vpop.permute.xlu0 %3529  ;;  %6592 = vmatmul.mubr.msk.f32.vlgmr.msra.gmra.mxu1 %vm974_vm8, %v6590_v51 }
 0x27d   : > { %v3539_v13 = vsel %vm820_vm7, %v3528_v50, %v3530_v47  ;;  %v3540_v21 = vsel %vm820_vm7, %v3530_v47, %v3532_v22  ;;  %3830 = vmatprep.mubr.f32.mxu1 %v6880_v63  ;;  %v3923_v63 = vld [vmem:[%s8534_s6 + $0x40] sm:$0x3] }
 0x27e   : > { %3725 = vmatprep.subr.mxu0 %v3540_v21 }
 0x27f   : > { %3726 = vmatpush1.msra.mxu0 %v3539_v13 }
 0x280   : > { %v3534_v42 = vpop.permute.xlu0 %3533  ;;  %6593 = vmatmul.mubr.msk.f32.vlgmr.msra.gmra.mxu0 %vm974_vm8, %v6590_v51  ;;  %3969 = vmatprep.subr.mxu0 %v3924_v45 }
 0x281   : > { %v3541_v35 = vsel %vm820_vm7, %v3532_v22, %v3534_v42  ;;  %3796 = vmatprep.subr.mxu1 %v3534_v42  ;;  %3970 = vmatpush1.xpose.msra.mxu0 %v3923_v63 }
 0x282   : > { %3797 = vmatpush1.msra.mxu1 %v3541_v35  ;;  %3971 = vmatprep.subr.mxu0 %v3916_v34 }
 0x283   : > { %6594 = vmatmul.mubr.msk.f32.vlgmr.msra.gmra.mxu1 %vm974_vm8, %v6590_v51  ;;  %4039 = vmatprep.subr.mxu1 %v3926_v33 }
 0x284   : > { %4040 = vmatpush1.xpose.msra.mxu1 %v3925_v59 }
 0x285   : > { %3972 = vmatpush1.xpose.msra.mxu0 %v3915_v28  ;;  %4041 = vmatprep.subr.mxu1 %v3918_v4 }
 0x286   : > { %4109 = vmatprep.subr.mxu0 %v3928_v23 }
 0x288   : > { %4042 = vmatpush1.xpose.msra.mxu1 %v3917_v3 }
 0x289   : > { %6595 = vmatprep.subr.msk.mxu1 %vm3931_vm9, %v3930_v57 }
 0x2e4   : > { %v1044_v46 = vpop.f32.mrf.mxu0 }
 0x2e6   : > { %v1046_v31 = vpop.f32.mrf.mxu0 }
 0x2e8   : > { %v1115_v10 = vpop.f32.mrf.mxu1 }
 0x2ea   : > { %v1117_v61 = vpop.f32.mrf.mxu1 }
 0x2ec   : > { %v1186_v37 = vpop.f32.mrf.mxu0  ;;  %v7950_v54 = vpop.f32.mrf.mxu1 }
 0x2ee   : > { %v7952_v44 = vpop.f32.mrf.mxu0  ;;  %v7954_v55 = vpop.f32.mrf.mxu1 }
 0x2f0   : > { %v1331_v58 = vpop.f32.mrf.mxu0 }
 0x2f1   : > { %v1402_v16 = vpop.f32.mrf.mxu1  ;;  %v1332_v35 = vadd.f32 %v1331_v58, %v1044_v46 }
 0x2f2   : > { %v1333_v24 = vpop.f32.mrf.mxu0  ;;  %v1403_v34 = vadd.f32 %v1402_v16, %v1115_v10  ;;  %v3878_v16 = vpop.permute.xlu0 %3877 }
 0x2f3   : > { %v1404_v29 = vpop.f32.mrf.mxu1  ;;  %v1334_v33 = vadd.f32 %v1333_v24, %v1046_v31 }
 0x2f4   : > { %v1473_v36 = vpop.f32.mrf.mxu0  ;;  %v1405_v23 = vadd.f32 %v1404_v29, %v1117_v61 }
 0x2f5   : > { %v1544_v62 = vpop.f32.mrf.mxu1 }
 0x2f6   : > { %v1475_v48 = vpop.f32.mrf.mxu0  ;;  %v1545_v58 = vadd.f32 %v1544_v62, %v7950_v54 }
 0x2f7   : > { %v7956_v8 = vpop.f32.mrf.mxu1 }
 0x2f8   : > { %v1651_v52 = vpop.f32.mrf.mxu0 }
 0x2f9   : > { %v1722_v38 = vpop.f32.mrf.mxu1  ;;  %v1869_v28 = vadd.f32 %v1651_v52, %v1332_v35 }
 0x2fa   : > { %v1653_v6 = vpop.f32.mrf.mxu0  ;;  %v1871_v3 = vadd.f32 %v1722_v38, %v1403_v34 }
 0x2fb   : > { %v1724_v7 = vpop.f32.mrf.mxu1  ;;  %v1870_v57 = vadd.f32 %v1653_v6, %v1334_v33 }
 0x2fc   : > { %v1793_v5 = vpop.f32.mrf.mxu0  ;;  %v1872_v24 = vadd.f32 %v1724_v7, %v1405_v23 }
 0x2fd   : > { %v7958_v15 = vpop.f32.mrf.mxu1 }
 0x2fe   : > { %v7960_v25 = vpop.f32.mrf.mxu0  ;;  %v1875_v54 = vadd.f32 %v7958_v15, %v1545_v58 }
 0x2ff   : > { %v7962_v53 = vpop.f32.mrf.mxu1 }
 0x300   : > { %v1979_v27 = vpop.f32.mrf.mxu0 }
 0x301   : > { %v2050_v1 = vpop.f32.mrf.mxu1 }
 0x302   : > { %v1981_v17 = vpop.f32.mrf.mxu0  ;;  %v2199_v52 = vadd.f32 %v2050_v1, %v1871_v3 }
 0x303   : > { %v2052_v41 = vpop.f32.mrf.mxu1 }
 0x304   : > { %v2121_v43 = vpop.f32.mrf.mxu0  ;;  %v2200_v6 = vadd.f32 %v2052_v41, %v1872_v24 }
 0x305   : > { %v7964_v39 = vpop.f32.mrf.mxu1 }
 0x306   : > { %v7966_v12 = vpop.f32.mrf.mxu0 }
 0x307   : > { %v7968_v56 = vpop.f32.mrf.mxu1 }
 0x308   : > { %v2307_v60 = vpop.f32.mrf.mxu0 }
 0x30a   : > { %v2309_v11 = vpop.f32.mrf.mxu0 }
 0x30c   : > { %v2378_v9 = vpop.f32.mrf.mxu1 }
 0x30e   : > { %v2380_v0 = vpop.f32.mrf.mxu1 }
 0x30f   : > { %v2528_v7 = vadd.f32 %v2380_v0, %v2200_v6 }
 0x310   : > { %v2449_v14 = vpop.f32.mrf.mxu0  ;;  %v7970_v49 = vpop.f32.mrf.mxu1 }
 0x312   : > { %v7972_v26 = vpop.f32.mrf.mxu0  ;;  %v7974_v18 = vpop.f32.mrf.mxu1 }
 0x313   : > { %8575 = vst [vmem:[#allocation7_spill] sm:$0xff] %v7974_v18 }
 0x314   : > { %v2635_v30 = vpop.f32.mrf.mxu0 }
 0x316   : > { %v2637_v51 = vpop.f32.mrf.mxu0 }
 0x318   : > { %v2706_v20 = vpop.f32.mrf.mxu1 }
 0x31a   : > { %v2708_v32 = vpop.f32.mrf.mxu1  ;;  %v8583_v3 = vld [vmem:[#allocation7_spill] sm:$0xff] }
 0x31c   : > { %v7976_v50 = vpop.f32.mrf.mxu0  ;;  %v7978_v40 = vpop.f32.mrf.mxu1 }
 0x31d   : > { %8576 = vst [vmem:[#allocation8_spill] sm:$0xff] %v7978_v40  ;;  %v1474_v40 = vadd.f32 %v1473_v36, %v1186_v37  ;;  %v2527_v37 = vadd.f32 %v2378_v9, %v2199_v52 }
 0x31e   : > { %v7980_v19 = vpop.f32.mrf.mxu0  ;;  %v7982_v2 = vpop.f32.mrf.mxu1 }
 0x31f   : > { %8577 = vst [vmem:[#allocation10_spill] sm:$0xff] %v7980_v19  ;;  %8578 = vst [vmem:[#allocation9_spill] sm:$0xff] %v7982_v2  ;;  %v2197_v2 = vadd.f32 %v1979_v27, %v1869_v28  ;;  %v7992_v19 = vpop.permute.xlu1 %3848  ;;  %v1873_v29 = vadd.f32 %v1793_v5, %v1474_v40  ;;  %v2855_v1 = vadd.f32 %v2706_v20, %v2527_v37  ;;  %v3876_v40 = vpop.permute.xlu0 %3875 }
 0x320   : > { %v2963_v22 = vpop.f32.mrf.mxu0 }
 0x321   : > { %v2525_v46 = vadd.f32 %v2307_v60, %v2197_v2  ;;  %v2201_v62 = vadd.f32 %v2121_v43, %v1873_v29  ;;  %v2856_v2 = vadd.f32 %v2708_v32, %v2528_v7  ;;  %v2203_v43 = vadd.f32 %v7964_v39, %v1875_v54 }
 0x322   : > { %v2965_v13 = vpop.f32.mrf.mxu0 }
 0x323   : > { %v2853_v61 = vadd.f32 %v2635_v30, %v2525_v46  ;;  %v8000_v5 = vpop.permute.xlu1 %3879  ;;  %v2529_v9 = vadd.f32 %v2449_v14, %v2201_v62 }
 0x324   : > { %v3034_v47 = vpop.f32.mrf.mxu1 }
 0x325   : > { %v3181_v27 = vadd.f32 %v2963_v22, %v2853_v61  ;;  %v2857_v20 = vadd.f32 %v7976_v50, %v2529_v9  ;;  %v3891_v61 = vsel %vm580_vm3, %v3876_v40, %v3878_v16 }
 0x326   : > { %v3036_v21 = vpop.f32.mrf.mxu1  ;;  %v8581_v34 = vld [vmem:[#allocation10_spill] sm:$0xff]  ;;  %v8585_v29 = vld [vmem:[#allocation9_spill] sm:$0xff] }
 0x327   : > { %v3882_v23 = vpop.permute.xlu1 %3881 }
 0x328   : > { %v7984_v42 = vpop.f32.mrf.mxu0  ;;  %v7986_v45 = vpop.f32.mrf.mxu1 }
 0x329   : > { %8579 = vst [vmem:[#allocation11_spill] sm:$0xff] %v7984_v42  ;;  %8580 = vst [vmem:[#allocation12_spill] sm:$0xff] %v7986_v45  ;;  %v2198_v42 = vadd.f32 %v1981_v17, %v1870_v57  ;;  %v1476_v45 = vadd.f32 %v1475_v48, %v7952_v44  ;;  %v1547_v17 = vadd.f32 %v7956_v8, %v7954_v55 }
 0x32a   : > { %v7988_v63 = vpop.f32.mrf.mxu0  ;;  %v7990_v59 = vpop.f32.mrf.mxu1  ;;  %v3183_v55 = vadd.f32 %v3034_v47, %v2855_v1  ;;  %v2531_v47 = vadd.f32 %v7970_v49, %v2203_v43 }
 0x32b   : > { %v2526_v35 = vadd.f32 %v2309_v11, %v2198_v42  ;;  %v1874_v44 = vadd.f32 %v7960_v25, %v1476_v45  ;;  %v1876_v25 = vadd.f32 %v7962_v53, %v1547_v17  ;;  %v3184_v42 = vadd.f32 %v3036_v21, %v2856_v2 }
 0x32c   : > { %v3291_v4 = vpop.f32.mrf.mxu0 }
 0x32d   : > { %v2854_v36 = vadd.f32 %v2637_v51, %v2526_v35  ;;  %v3509_v30 = vadd.f32 %v3291_v4, %v3181_v27  ;;  %v2202_v41 = vadd.f32 %v7966_v12, %v1874_v44  ;;  %v2204_v32 = vadd.f32 %v7968_v56, %v1876_v25 }
 0x32e   : > { %v3293_v10 = vpop.f32.mrf.mxu0 }
 0x32f   : > { %v3182_v11 = vadd.f32 %v2965_v13, %v2854_v36  ;;  %v2530_v0 = vadd.f32 %v7972_v26, %v2202_v41  ;;  %v2532_v21 = vadd.f32 %v8583_v3, %v2204_v32  ;;  %v6599_v3 = vld [vmem:[%s8534_s6 + $0x88] sm:$0xff] }
 0x330   : > { %v3362_v18 = vpop.f32.mrf.mxu1  ;;  %v8582_v28 = vld [vmem:[#allocation11_spill] sm:$0xff]  ;;  %v8586_v37 = vld [vmem:[#allocation12_spill] sm:$0xff] }
 0x331   : > { %v3510_v8 = vadd.f32 %v3293_v10, %v3182_v11  ;;  %v3511_v45 = vadd.f32 %v3362_v18, %v3183_v55  ;;  %v2858_v33 = vadd.f32 %v8581_v34, %v2530_v0  ;;  %v3185_v39 = vadd.f32 %v8582_v28, %v2857_v20  ;;  %v8584_v18 = vld [vmem:[#allocation8_spill] sm:$0xff]  ;;  %v3884_v10 = vpop.permute.xlu0 %3883 }
 0x332   : > { %v3364_v31 = vpop.f32.mrf.mxu1  ;;  %v2859_v57 = vadd.f32 %v8584_v18, %v2531_v47  ;;  %v2860_v6 = vadd.f32 %v8585_v29, %v2532_v21  ;;  %v3893_v55 = vsel %vm580_vm3, %v8000_v5, %v3882_v23  ;;  %v6609_v21 = vld [vmem:[%s8534_s6 + $0xd8] sm:$0x3] }
 0x333   : > { %v3512_v4 = vadd.f32 %v3364_v31, %v3184_v42  ;;  %v3186_v46 = vadd.f32 %v7988_v63, %v2858_v33  ;;  %v3892_v31 = vsel %vm580_vm3, %v3878_v16, %v8000_v5  ;;  %v3927_v16 = vld [vmem:[%s8534_s6 + $0x60] sm:$0x3]  ;;  %v3929_v5 = vld [vmem:[%s8534_s6 + $0x70] sm:$0x3]  ;;  %v6613_v29 = vld [vmem:[%s8534_s6 + $0xf8] sm:$0x3] }
 0x334   : > { %v3433_v38 = vpop.f32.mrf.mxu0  ;;  %v3504_v48 = vpop.f32.mrf.mxu1  ;;  %v3187_v36 = vadd.f32 %v8586_v37, %v2859_v57  ;;  %v3188_v44 = vadd.f32 %v7990_v59, %v2860_v6  ;;  %v3920_v59 = vld [vmem:[%s8534_s6 + $0x28] sm:$0xff]  ;;  %v6602_v37 = vld [vmem:[%s8534_s6 + $0xa0] sm:$0xff] }
 0x335   : > { %v3513_v49 = vadd.f32 %v3433_v38, %v3185_v39 }
 0x336   : > { %v3435_v60 = vpop.f32.mrf.mxu0  ;;  %v3506_v22 = vpop.f32.mrf.mxu1  ;;  %v3515_v62 = vadd.f32 %v3504_v48, %v3187_v36  ;;  %v3894_v48 = vsel %vm580_vm3, %v3882_v23, %v3884_v10  ;;  %v6612_v36 = vld [vmem:[%s8534_s6 + $0xf0] sm:$0x3] }
 0x337   : > { %v3514_v17 = vadd.f32 %v3435_v60, %v3186_v46  ;;  %v3516_v40 = vadd.f32 %v3506_v22, %v3188_v44  ;;  %v3919_v22 = vld [vmem:[%s8534_s6 + $0x20] sm:$0xff]  ;;  %v6604_v44 = vld [vmem:[%s8534_s6 + $0xb0] sm:$0xff] }
 0x338   : > { %v3619_v51 = vpop.f32.mrf.mxu0  ;;  %v6598_v46 = vld [vmem:[%s8534_s6 + $0x80] sm:$0xff] }
 0x339   : > { %v3837_v15 = vadd.f32 %v3619_v51, %v3509_v30  ;;  %v3886_v51 = vpop.permute.xlu1 %3885 }
 0x33a   : > { %v3621_v13 = vpop.f32.mrf.mxu0  ;;  %v3895_v34 = vsel %vm580_vm3, %v3884_v10, %v3886_v51 }
 0x33b   : > { %v3851_v12 = vadd.f32 %v7992_v19, %v3837_v15  ;;  %v3838_v14 = vadd.f32 %v3621_v13, %v3510_v8  ;;  %v3888_v8 = vpop.permute.xlu0 %3887 }
 0x33c   : > { %v3690_v53 = vpop.f32.mrf.mxu1  ;;  %v3896_v32 = vsel %vm580_vm3, %v3886_v51, %v3888_v8 }
 0x33d   : > { %v3852_v26 = vadd.f32 %v7992_v19, %v3838_v14  ;;  %v3839_v50 = vadd.f32 %v3690_v53, %v3511_v45  ;;  %v3859_v58 = vmax.f32 %v3851_v12, 0.0  ;;  %v3922_v12 = vld [vmem:[%s8534_s6 + $0x38] sm:$0xff]  ;;  %v6607_v14 = vld [vmem:[%s8534_s6 + $0xc8] sm:$0x3] }
 0x33e   : > { %v3692_v56 = vpop.f32.mrf.mxu1 }
 0x33f   : > { %v3860_v24 = vmax.f32 %v3852_v26, 0.0  ;;  %v3853_v52 = vadd.f32 %v7992_v19, %v3839_v50  ;;  %v3840_v35 = vadd.f32 %v3692_v56, %v3512_v4  ;;  %v8026_v7 = vadd.f32 %v3891_v61, %v3859_v58  ;;  %v3921_v4 = vld [vmem:[%s8534_s6 + $0x30] sm:$0xff]  ;;  %v3890_v26 = vpop.permute.xlu1 %3889  ;;  %v6601_v56 = vld [vmem:[%s8534_s6 + $0x98] sm:$0xff] }
 0x340   : > { %v3761_v27 = vpop.f32.mrf.mxu0  ;;  %v3897_v18 = vsel %vm580_vm3, %v3888_v8, %v3890_v26  ;;  %v6608_v58 = vld [vmem:[%s8534_s6 + $0xd0] sm:$0x3] }
 0x341   : > { %v8022_v63 = vadd.f32 %v3892_v31, %v3860_v24  ;;  %v3854_v54 = vadd.f32 %v7992_v19, %v3840_v35  ;;  %v3841_v38 = vadd.f32 %v3761_v27, %v3513_v49  ;;  %v3861_v1 = vmax.f32 %v3853_v52, 0.0  ;;  %v6611_v49 = vld [vmem:[%s8534_s6 + $0xe8] sm:$0x3]  ;;  %v6600_v52 = vld [vmem:[%s8534_s6 + $0x90] sm:$0xff]  ;;  %v6610_v35 = vld [vmem:[%s8534_s6 + $0xe0] sm:$0x3] }
 0x342   : > { %v3763_v11 = vpop.f32.mrf.mxu0  ;;  %v4246_v24 = vrot.slane %v8026_v7, 1  ;;  %v6603_v31 = vld [vmem:[%s8534_s6 + $0xa8] sm:$0xff]  ;;  %v6605_v27 = vld [vmem:[%s8534_s6 + $0xb8] sm:$0xff]  ;;  %v4567_v51 = vrot.slane %v8026_v7, 2 }
 0x343   : > { %v3862_v30 = vmax.f32 %v3854_v54, 0.0  ;;  %v3855_v41 = vadd.f32 %v7992_v19, %v3841_v38  ;;  %v3842_v60 = vadd.f32 %v3763_v11, %v3514_v17  ;;  %v3832_v9 = vpop.f32.mrf.mxu1  ;;  %4005 = vmatprep.mubr.f32.mxu0 %v8022_v63  ;;  %v8043_v0 = vadd.f32 %v3893_v55, %v3861_v1  ;;  %v6626_v54 = vld [vmem:[%s8534_s6 + $0x148] sm:$0x3] }
 0x344   : > { %v3843_v2 = vadd.f32 %v3832_v9, %v3515_v62  ;;  %4006 = vmatmul.mubr.f32.vlgmr.msra.gmra.mxu0 %v8026_v7  ;;  %v4247_v23 = vrot.slane %v8022_v63, 1  ;;  %v6625_v62 = vld [vmem:[%s8534_s6 + $0x140] sm:$0x3]  ;;  %v6618_v1 = vld [vmem:[%s8534_s6 + $0x108] sm:$0xff]  ;;  %v4568_v11 = vrot.slane %v8022_v63, 2  ;;  %v6620_v9 = vld [vmem:[%s8534_s6 + $0x118] sm:$0xff] }
 0x345   : > { %v8040_v15 = vadd.f32 %v3894_v48, %v3862_v30  ;;  %v3856_v25 = vadd.f32 %v7992_v19, %v3842_v60  ;;  %4110 = vmatpush1.xpose.msra.mxu0 %v3927_v16  ;;  %v3834_v43 = vpop.f32.mrf.mxu1  ;;  %v3863_v20 = vmax.f32 %v3855_v41, 0.0  ;;  %v4248_v6 = vrot.slane %v8043_v0, 1  ;;  %v6628_v16 = vld [vmem:[%s8534_s6 + $0x158] sm:$0x3]  ;;  %v6617_v41 = vld [vmem:[%s8534_s6 + $0x100] sm:$0xff]  ;;  %v6622_v55 = vld [vmem:[%s8534_s6 + $0x128] sm:$0xff] }
 0x346   : > { %v3857_v13 = vadd.f32 %v7992_v19, %v3843_v2  ;;  %v3844_v42 = vadd.f32 %v3834_v43, %v3516_v40  ;;  %4111 = vmatprep.subr.mxu0 %v3920_v59  ;;  %v6627_v60 = vld [vmem:[%s8534_s6 + $0x150] sm:$0x3]  ;;  %v6630_v48 = vld [vmem:[%s8534_s6 + $0x168] sm:$0x3]  ;;  %v6629_v2 = vld [vmem:[%s8534_s6 + $0x160] sm:$0x3] }
 0x347   : > { %v3864_v45 = vmax.f32 %v3856_v25, 0.0  ;;  %4075 = vmatprep.mubr.f32.mxu1 %v8040_v15  ;;  %v8065_v53 = vadd.f32 %v3895_v34, %v3863_v20  ;;  %v4249_v10 = vrot.slane %v8040_v15, 1  ;;  %v4570_v59 = vrot.slane %v8040_v15, 2  ;;  %v6619_v40 = vld [vmem:[%s8534_s6 + $0x110] sm:$0xff]  ;;  %v6632_v25 = vld [vmem:[%s8534_s6 + $0x178] sm:$0x3] }
 0x348   : > { %v3858_v47 = vadd.f32 %v7992_v19, %v3844_v42  ;;  %4076 = vmatmul.mubr.f32.vlgmr.msra.gmra.mxu1 %v8043_v0  ;;  %v3865_v28 = vmax.f32 %v3857_v13, 0.0  ;;  %v6606_v19 = vld [vmem:[%s8534_s6 + $0xc0] sm:$0x3]  ;;  %v4569_v43 = vrot.slane %v8043_v0, 2  ;;  %v6631_v13 = vld [vmem:[%s8534_s6 + $0x170] sm:$0x3] }
 0x349   : > { %v8063_v33 = vadd.f32 %v3896_v32, %v3864_v45  ;;  %4112 = vmatpush1.xpose.msra.mxu0 %v3919_v22  ;;  %4180 = vmatpush1.xpose.msra.mxu1 %v3929_v5  ;;  %v4250_v38 = vrot.slane %v8065_v53, 1  ;;  %v6621_v20 = vld [vmem:[%s8534_s6 + $0x120] sm:$0xff]  ;;  %v6624_v42 = vld [vmem:[%s8534_s6 + $0x138] sm:$0xff]  ;;  %v6645_v5 = vld [vmem:[%s8534_s6 + $0x1c8] sm:$0x3]  ;;  %v4571_v45 = vrot.slane %v8065_v53, 2 }
 0x34a   : > { %v3866_v39 = vmax.f32 %v3858_v47, 0.0  ;;  %6596 = vmatprep.subr.msk.mxu1 %vm3931_vm9, %v3922_v12  ;;  %4297 = vmatprep.subr.mxu0 %v6607_v14  ;;  %v8086_v57 = vadd.f32 %v3897_v18, %v3865_v28  ;;  %v6623_v12 = vld [vmem:[%s8534_s6 + $0x130] sm:$0xff]  ;;  %v6644_v14 = vld [vmem:[%s8534_s6 + $0x1c0] sm:$0x3]  ;;  %v6637_v32 = vld [vmem:[%s8534_s6 + $0x188] sm:$0xff]  ;;  %v4889_v47 = vrot.slane %v8022_v63, 3 }
 0x34b   : > { %4145 = vmatprep.mubr.f32.mxu0 %v8063_v33  ;;  %v4251_v61 = vrot.slane %v8063_v33, 1  ;;  %v4572_v8 = vrot.slane %v8063_v33, 2  ;;  %v6647_v34 = vld [vmem:[%s8534_s6 + $0x1d8] sm:$0x3]  ;;  %v6648_v18 = vld [vmem:[%s8534_s6 + $0x1e0] sm:$0x3] }
 0x34c   : > { %v8075_v50 = vadd.f32 %v3890_v26, %v3866_v39  ;;  %4146 = vmatmul.mubr.f32.vlgmr.msra.gmra.mxu0 %v8065_v53  ;;  %v4252_v30 = vrot.slane %v8086_v57, 1  ;;  %v4573_v28 = vrot.slane %v8086_v57, 2  ;;  %v6636_v39 = vld [vmem:[%s8534_s6 + $0x180] sm:$0xff]  ;;  %v4891_v26 = vrot.slane %v8040_v15, 3 }
 0x34d   : > { %4182 = vmatpush1.xpose.msra.mxu1 %v3921_v4  ;;  %4298 = vmatpush1.xpose.msra.mxu0 %v6606_v19  ;;  %v6646_v4 = vld [vmem:[%s8534_s6 + $0x1d0] sm:$0x3]  ;;  %v6639_v19 = vld [vmem:[%s8534_s6 + $0x198] sm:$0xff] }
 0x34e   : > { %4333 = vmatprep.mubr.f32.mxu0 %v4247_v23  ;;  %6597 = vmatprep.mubr.msk.f32.mxu1 %vm3931_vm9, %v8075_v50  ;;  %v4253_v17 = vrot.slane %v8075_v50, 1  ;;  %v4574_v22 = vrot.slane %v8075_v50, 2  ;;  %v6649_v23 = vld [vmem:[%s8534_s6 + $0x1e8] sm:$0x3] }
 0x34f   : > { %4299 = vmatprep.subr.mxu0 %v6599_v3  ;;  %4367 = vmatprep.subr.mxu1 %v6609_v21  ;;  %v4888_v3 = vrot.slane %v8026_v7, 3  ;;  %v6638_v21 = vld [vmem:[%s8534_s6 + $0x190] sm:$0xff] }
 0x350   : > { %4216 = vmatmul.mubr.f32.vlgmr.msra.gmra.mxu1 %v8086_v57 }
 0x351   : > { %4300 = vmatpush1.xpose.msra.mxu0 %v6598_v46  ;;  %4368 = vmatpush1.xpose.msra.mxu1 %v6608_v58  ;;  %v6641_v46 = vld [vmem:[%s8534_s6 + $0x1a8] sm:$0xff]  ;;  %v4893_v58 = vrot.slane %v8063_v33, 3 }
 0x352   : > { %4403 = vmatprep.mubr.f32.mxu1 %v4249_v10  ;;  %4369 = vmatprep.subr.mxu1 %v6601_v56  ;;  %v6651_v56 = vld [vmem:[%s8534_s6 + $0x1f8] sm:$0x3]  ;;  %v4890_v10 = vrot.slane %v8043_v0, 3 }
 0x353   : > { %4437 = vmatprep.subr.mxu0 %v6611_v49  ;;  %v6640_v49 = vld [vmem:[%s8534_s6 + $0x1a0] sm:$0xff] }
 0x354   : > { %4334 = vmatmul.mubr.f32.vlgmr.msra.gmra.mxu0 %v4246_v24  ;;  %v6650_v24 = vld [vmem:[%s8534_s6 + $0x1f0] sm:$0x3] }
 0x355   : > { %4370 = vmatpush1.xpose.msra.mxu1 %v6600_v52  ;;  %4438 = vmatpush1.xpose.msra.mxu0 %v6610_v35  ;;  %v6643_v52 = vld [vmem:[%s8534_s6 + $0x1b8] sm:$0xff]  ;;  %v4895_v35 = vrot.slane %v8075_v50, 3 }
 0x356   : > { %4473 = vmatprep.mubr.f32.mxu0 %v4251_v61  ;;  %4439 = vmatprep.subr.mxu0 %v6603_v31  ;;  %v6664_v31 = vld [vmem:[%s8534_s6 + $0x248] sm:$0x3]  ;;  %v4892_v61 = vrot.slane %v8065_v53, 3 }
 0x357   : > { %6614 = vmatprep.subr.msk.mxu1 %vm3931_vm9, %v6613_v29  ;;  %v6642_v29 = vld [vmem:[%s8534_s6 + $0x1b0] sm:$0xff] }
 0x358   : > { %4404 = vmatmul.mubr.f32.vlgmr.msra.gmra.mxu1 %v4248_v6  ;;  %v6663_v6 = vld [vmem:[%s8534_s6 + $0x240] sm:$0x3] }
 0x359   : > { %4440 = vmatpush1.xpose.msra.mxu0 %v6602_v37  ;;  %4508 = vmatpush1.xpose.msra.mxu1 %v6612_v36  ;;  %v6656_v37 = vld [vmem:[%s8534_s6 + $0x208] sm:$0xff]  ;;  %v5210_v36 = vrot.slane %v8022_v63, 4 }
 0x35a   : > { %6616 = vmatprep.mubr.msk.f32.mxu1 %vm3931_vm9, %v4253_v17  ;;  %6615 = vmatprep.subr.msk.mxu1 %vm3931_vm9, %v6605_v27  ;;  %v6666_v27 = vld [vmem:[%s8534_s6 + $0x258] sm:$0x3]  ;;  %v4894_v17 = vrot.slane %v8086_v57, 3 }
 0x35b   : > { %4618 = vmatprep.subr.mxu0 %v6626_v54  ;;  %v6655_v54 = vld [vmem:[%s8534_s6 + $0x200] sm:$0xff] }
 0x35c   : > { %4474 = vmatmul.mubr.f32.vlgmr.msra.gmra.mxu0 %v4250_v38  ;;  %v6665_v38 = vld [vmem:[%s8534_s6 + $0x250] sm:$0x3] }
 0x35d   : > { %4510 = vmatpush1.xpose.msra.mxu1 %v6604_v44  ;;  %4619 = vmatpush1.xpose.msra.mxu0 %v6625_v62  ;;  %v6658_v44 = vld [vmem:[%s8534_s6 + $0x218] sm:$0xff]  ;;  %v5212_v62 = vrot.slane %v8040_v15, 4 }
 0x35e   : > { %4654 = vmatprep.mubr.f32.mxu0 %v4568_v11  ;;  %4620 = vmatprep.subr.mxu0 %v6618_v1  ;;  %v6668_v1 = vld [vmem:[%s8534_s6 + $0x268] sm:$0x3]  ;;  %v5209_v11 = vrot.slane %v8026_v7, 4 }
 0x35f   : > { %4688 = vmatprep.subr.mxu1 %v6628_v16  ;;  %v6657_v16 = vld [vmem:[%s8534_s6 + $0x210] sm:$0xff] }
 0x360   : > { %4544 = vmatmul.mubr.f32.vlgmr.msra.gmra.mxu1 %v4252_v30  ;;  %v6667_v30 = vld [vmem:[%s8534_s6 + $0x260] sm:$0x3] }
 0x361   : > { %4621 = vmatpush1.xpose.msra.mxu0 %v6617_v41  ;;  %4689 = vmatpush1.xpose.msra.mxu1 %v6627_v60  ;;  %v6660_v41 = vld [vmem:[%s8534_s6 + $0x228] sm:$0xff]  ;;  %v5214_v60 = vrot.slane %v8063_v33, 4 }
 0x362   : > { %4724 = vmatprep.mubr.f32.mxu1 %v4570_v59  ;;  %4690 = vmatprep.subr.mxu1 %v6620_v9  ;;  %v6670_v9 = vld [vmem:[%s8534_s6 + $0x278] sm:$0x3]  ;;  %v5211_v59 = vrot.slane %v8043_v0, 4 }
 0x363   : > { %4758 = vmatprep.subr.mxu0 %v6630_v48  ;;  %v6659_v48 = vld [vmem:[%s8534_s6 + $0x220] sm:$0xff] }
 0x364   : > { %4655 = vmatmul.mubr.f32.vlgmr.msra.gmra.mxu0 %v4567_v51  ;;  %v6669_v51 = vld [vmem:[%s8534_s6 + $0x270] sm:$0x3] }
 0x365   : > { %4691 = vmatpush1.xpose.msra.mxu1 %v6619_v40  ;;  %4759 = vmatpush1.xpose.msra.mxu0 %v6629_v2  ;;  %v6662_v40 = vld [vmem:[%s8534_s6 + $0x238] sm:$0xff]  ;;  %v5216_v2 = vrot.slane %v8075_v50, 4 }
 0x366   : > { %4794 = vmatprep.mubr.f32.mxu0 %v4572_v8  ;;  %4760 = vmatprep.subr.mxu0 %v6622_v55  ;;  %v6683_v55 = vld [vmem:[%s8534_s6 + $0x2c8] sm:$0x3]  ;;  %v5213_v8 = vrot.slane %v8065_v53, 4 }
 0x367   : > { %6633 = vmatprep.subr.msk.mxu1 %vm3931_vm9, %v6632_v25  ;;  %v6661_v25 = vld [vmem:[%s8534_s6 + $0x230] sm:$0xff] }
 0x368   : > { %4725 = vmatmul.mubr.f32.vlgmr.msra.gmra.mxu1 %v4569_v43  ;;  %v6682_v43 = vld [vmem:[%s8534_s6 + $0x2c0] sm:$0x3] }
 0x369   : > { %4761 = vmatpush1.xpose.msra.mxu0 %v6621_v20  ;;  %4829 = vmatpush1.xpose.msra.mxu1 %v6631_v13  ;;  %v6675_v20 = vld [vmem:[%s8534_s6 + $0x288] sm:$0xff]  ;;  %v5531_v13 = vrot.slane %v8022_v63, 5 }
 0x36a   : > { %6635 = vmatprep.mubr.msk.f32.mxu1 %vm3931_vm9, %v4574_v22  ;;  %6634 = vmatprep.subr.msk.mxu1 %vm3931_vm9, %v6624_v42  ;;  %v6685_v42 = vld [vmem:[%s8534_s6 + $0x2d8] sm:$0x3]  ;;  %v5215_v22 = vrot.slane %v8086_v57, 4 }
 0x36b   : > { %4939 = vmatprep.subr.mxu0 %v6645_v5  ;;  %v6674_v5 = vld [vmem:[%s8534_s6 + $0x280] sm:$0xff] }
 0x36c   : > { %4795 = vmatmul.mubr.f32.vlgmr.msra.gmra.mxu0 %v4571_v45  ;;  %v6684_v45 = vld [vmem:[%s8534_s6 + $0x2d0] sm:$0x3] }
 0x36d   : > { %4831 = vmatpush1.xpose.msra.mxu1 %v6623_v12  ;;  %4940 = vmatpush1.xpose.msra.mxu0 %v6644_v14  ;;  %v6677_v12 = vld [vmem:[%s8534_s6 + $0x298] sm:$0xff]  ;;  %v5533_v14 = vrot.slane %v8040_v15, 5 }
 0x36e   : > { %4975 = vmatprep.mubr.f32.mxu0 %v4889_v47  ;;  %4941 = vmatprep.subr.mxu0 %v6637_v32  ;;  %v6687_v32 = vld [vmem:[%s8534_s6 + $0x2e8] sm:$0x3]  ;;  %v5530_v47 = vrot.slane %v8026_v7, 5 }
 0x36f   : > { %5009 = vmatprep.subr.mxu1 %v6647_v34  ;;  %v6676_v34 = vld [vmem:[%s8534_s6 + $0x290] sm:$0xff] }
 0x370   : > { %4865 = vmatmul.mubr.f32.vlgmr.msra.gmra.mxu1 %v4573_v28  ;;  %v6686_v28 = vld [vmem:[%s8534_s6 + $0x2e0] sm:$0x3] }
 0x371   : > { %4942 = vmatpush1.xpose.msra.mxu0 %v6636_v39  ;;  %5010 = vmatpush1.xpose.msra.mxu1 %v6646_v4  ;;  %v6679_v39 = vld [vmem:[%s8534_s6 + $0x2a8] sm:$0xff]  ;;  %v5535_v4 = vrot.slane %v8063_v33, 5 }
 0x372   : > { %5045 = vmatprep.mubr.f32.mxu1 %v4891_v26  ;;  %5011 = vmatprep.subr.mxu1 %v6639_v19  ;;  %v6689_v19 = vld [vmem:[%s8534_s6 + $0x2f8] sm:$0x3]  ;;  %v5532_v26 = vrot.slane %v8043_v0, 5 }
 0x373   : > { %5079 = vmatprep.subr.mxu0 %v6649_v23  ;;  %v6678_v23 = vld [vmem:[%s8534_s6 + $0x2a0] sm:$0xff] }
 0x374   : > { %4976 = vmatmul.mubr.f32.vlgmr.msra.gmra.mxu0 %v4888_v3  ;;  %v6688_v3 = vld [vmem:[%s8534_s6 + $0x2f0] sm:$0x3] }
 0x375   : > { %5012 = vmatpush1.xpose.msra.mxu1 %v6638_v21  ;;  %5080 = vmatpush1.xpose.msra.mxu0 %v6648_v18  ;;  %v6681_v21 = vld [vmem:[%s8534_s6 + $0x2b8] sm:$0xff]  ;;  %v5537_v18 = vrot.slane %v8075_v50, 5 }
 0x376   : > { %5115 = vmatprep.mubr.f32.mxu0 %v4893_v58  ;;  %5081 = vmatprep.subr.mxu0 %v6641_v46  ;;  %v6702_v46 = vld [vmem:[%s8534_s6 + $0x348] sm:$0x3]  ;;  %v5534_v58 = vrot.slane %v8065_v53, 5 }
 0x377   : > { %6652 = vmatprep.subr.msk.mxu1 %vm3931_vm9, %v6651_v56  ;;  %v6680_v56 = vld [vmem:[%s8534_s6 + $0x2b0] sm:$0xff] }
 0x378   : > { %5046 = vmatmul.mubr.f32.vlgmr.msra.gmra.mxu1 %v4890_v10  ;;  %v6701_v10 = vld [vmem:[%s8534_s6 + $0x340] sm:$0x3] }
 0x379   : > { %5082 = vmatpush1.xpose.msra.mxu0 %v6640_v49  ;;  %5150 = vmatpush1.xpose.msra.mxu1 %v6650_v24  ;;  %v6694_v49 = vld [vmem:[%s8534_s6 + $0x308] sm:$0xff]  ;;  %v5852_v24 = vrot.slane %v8022_v63, 6 }
 0x37a   : > { %6654 = vmatprep.mubr.msk.f32.mxu1 %vm3931_vm9, %v4895_v35  ;;  %6653 = vmatprep.subr.msk.mxu1 %vm3931_vm9, %v6643_v52  ;;  %v6704_v52 = vld [vmem:[%s8534_s6 + $0x358] sm:$0x3]  ;;  %v5536_v35 = vrot.slane %v8086_v57, 5 }
 0x37b   : > { %5260 = vmatprep.subr.mxu0 %v6664_v31  ;;  %v6693_v31 = vld [vmem:[%s8534_s6 + $0x300] sm:$0xff] }
 0x37c   : > { %5116 = vmatmul.mubr.f32.vlgmr.msra.gmra.mxu0 %v4892_v61  ;;  %v6703_v61 = vld [vmem:[%s8534_s6 + $0x350] sm:$0x3] }
 0x37d   : > { %5152 = vmatpush1.xpose.msra.mxu1 %v6642_v29  ;;  %5261 = vmatpush1.xpose.msra.mxu0 %v6663_v6  ;;  %v6696_v29 = vld [vmem:[%s8534_s6 + $0x318] sm:$0xff]  ;;  %v5854_v6 = vrot.slane %v8040_v15, 6 }
 0x37e   : > { %5296 = vmatprep.mubr.f32.mxu0 %v5210_v36  ;;  %5262 = vmatprep.subr.mxu0 %v6656_v37  ;;  %v6706_v37 = vld [vmem:[%s8534_s6 + $0x368] sm:$0x3]  ;;  %v5851_v36 = vrot.slane %v8026_v7, 6 }
 0x37f   : > { %5330 = vmatprep.subr.mxu1 %v6666_v27  ;;  %v6695_v27 = vld [vmem:[%s8534_s6 + $0x310] sm:$0xff] }
 0x380   : > { %5186 = vmatmul.mubr.f32.vlgmr.msra.gmra.mxu1 %v4894_v17  ;;  %v6705_v17 = vld [vmem:[%s8534_s6 + $0x360] sm:$0x3] }
 0x381   : > { %5263 = vmatpush1.xpose.msra.mxu0 %v6655_v54  ;;  %5331 = vmatpush1.xpose.msra.mxu1 %v6665_v38  ;;  %v6698_v54 = vld [vmem:[%s8534_s6 + $0x328] sm:$0xff]  ;;  %v5856_v38 = vrot.slane %v8063_v33, 6 }
 0x382   : > { %5366 = vmatprep.mubr.f32.mxu1 %v5212_v62  ;;  %5332 = vmatprep.subr.mxu1 %v6658_v44  ;;  %v6708_v44 = vld [vmem:[%s8534_s6 + $0x378] sm:$0x3]  ;;  %v5853_v62 = vrot.slane %v8043_v0, 6 }
 0x383   : > { %5400 = vmatprep.subr.mxu0 %v6668_v1  ;;  %v6697_v1 = vld [vmem:[%s8534_s6 + $0x320] sm:$0xff] }
 0x384   : > { %5297 = vmatmul.mubr.f32.vlgmr.msra.gmra.mxu0 %v5209_v11  ;;  %v6707_v11 = vld [vmem:[%s8534_s6 + $0x370] sm:$0x3] }
 0x385   : > { %5333 = vmatpush1.xpose.msra.mxu1 %v6657_v16  ;;  %5401 = vmatpush1.xpose.msra.mxu0 %v6667_v30  ;;  %v6700_v16 = vld [vmem:[%s8534_s6 + $0x338] sm:$0xff]  ;;  %v5858_v30 = vrot.slane %v8075_v50, 6 }
 0x386   : > { %5436 = vmatprep.mubr.f32.mxu0 %v5214_v60  ;;  %5402 = vmatprep.subr.mxu0 %v6660_v41  ;;  %v6721_v41 = vld [vmem:[%s8534_s6 + $0x3c8] sm:$0x3]  ;;  %v5855_v60 = vrot.slane %v8065_v53, 6 }
 0x387   : > { %6671 = vmatprep.subr.msk.mxu1 %vm3931_vm9, %v6670_v9  ;;  %v6699_v9 = vld [vmem:[%s8534_s6 + $0x330] sm:$0xff] }
 0x388   : > { %5367 = vmatmul.mubr.f32.vlgmr.msra.gmra.mxu1 %v5211_v59  ;;  %v6720_v59 = vld [vmem:[%s8534_s6 + $0x3c0] sm:$0x3] }
 0x389   : > { %5403 = vmatpush1.xpose.msra.mxu0 %v6659_v48  ;;  %5471 = vmatpush1.xpose.msra.mxu1 %v6669_v51  ;;  %v6713_v48 = vld [vmem:[%s8534_s6 + $0x388] sm:$0xff]  ;;  %v6173_v51 = vrot.slane %v8022_v63, 7  ;;  %v6715_v63 = vld [vmem:[%s8534_s6 + $0x398] sm:$0xff] }
 0x38a   : > { %6673 = vmatprep.mubr.msk.f32.mxu1 %vm3931_vm9, %v5216_v2  ;;  %6672 = vmatprep.subr.msk.mxu1 %vm3931_vm9, %v6662_v40  ;;  %v6723_v40 = vld [vmem:[%s8534_s6 + $0x3d8] sm:$0x3]  ;;  %v5857_v2 = vrot.slane %v8086_v57, 6 }
 0x38b   : > { %5581 = vmatprep.subr.mxu0 %v6683_v55  ;;  %v6712_v55 = vld [vmem:[%s8534_s6 + $0x380] sm:$0xff] }
 0x38c   : > { %5437 = vmatmul.mubr.f32.vlgmr.msra.gmra.mxu0 %v5213_v8  ;;  %v6722_v8 = vld [vmem:[%s8534_s6 + $0x3d0] sm:$0x3] }
 0x38d   : > { %5473 = vmatpush1.xpose.msra.mxu1 %v6661_v25  ;;  %5582 = vmatpush1.xpose.msra.mxu0 %v6682_v43  ;;  %v6175_v25 = vrot.slane %v8040_v15, 7  ;;  %v6725_v43 = vld [vmem:[%s8534_s6 + $0x3e8] sm:$0x3] }
 0x38e   : > { %5617 = vmatprep.mubr.f32.mxu0 %v5531_v13  ;;  %5583 = vmatprep.subr.mxu0 %v6675_v20  ;;  %v6172_v20 = vrot.slane %v8026_v7, 7  ;;  %v6714_v13 = vld [vmem:[%s8534_s6 + $0x390] sm:$0xff]  ;;  %v6717_v15 = vld [vmem:[%s8534_s6 + $0x3a8] sm:$0xff]  ;;  %v6727_v7 = vld [vmem:[%s8534_s6 + $0x3f8] sm:$0x3] }
 0x38f   : > { %5651 = vmatprep.subr.mxu1 %v6685_v42  ;;  %v6724_v42 = vld [vmem:[%s8534_s6 + $0x3e0] sm:$0x3] }
 0x390   : > { %5507 = vmatmul.mubr.f32.vlgmr.msra.gmra.mxu1 %v5215_v22  ;;  %v6177_v22 = vrot.slane %v8063_v33, 7  ;;  %v6719_v33 = vld [vmem:[%s8534_s6 + $0x3b8] sm:$0xff] }
 0x391   : > { %5584 = vmatpush1.xpose.msra.mxu0 %v6674_v5  ;;  %5652 = vmatpush1.xpose.msra.mxu1 %v6684_v45  ;;  %v6174_v5 = vrot.slane %v8043_v0, 7  ;;  %v6716_v45 = vld [vmem:[%s8534_s6 + $0x3a0] sm:$0xff]  ;;  %v6176_v0 = vrot.slane %v8065_v53, 7 }
 0x392   : > { %5687 = vmatprep.mubr.f32.mxu1 %v5533_v14  ;;  %5653 = vmatprep.subr.mxu1 %v6677_v12  ;;  %v6726_v12 = vld [vmem:[%s8534_s6 + $0x3f0] sm:$0x3]  ;;  %v6179_v14 = vrot.slane %v8075_v50, 7 }
 0x393   : > { %5721 = vmatprep.subr.mxu0 %v6687_v32  ;;  %v6718_v32 = vld [vmem:[%s8534_s6 + $0x3b0] sm:$0xff] }
 0x394   : > { %5618 = vmatmul.mubr.f32.vlgmr.msra.gmra.mxu0 %v5530_v47  ;;  %v6178_v47 = vrot.slane %v8086_v57, 7  ;;  %v3914_v57 = vld [vmem:[%s8535_s7] sm:$0x1] }
 0x395   : > { %5654 = vmatpush1.xpose.msra.mxu1 %v6676_v34  ;;  %5722 = vmatpush1.xpose.msra.mxu0 %v6686_v28 }
 0x396   : > { %5757 = vmatprep.mubr.f32.mxu0 %v5535_v4  ;;  %5723 = vmatprep.subr.mxu0 %v6679_v39 }
 0x397   : > { %6690 = vmatprep.subr.msk.mxu1 %vm3931_vm9, %v6689_v19 }
 0x398   : > { %5688 = vmatmul.mubr.f32.vlgmr.msra.gmra.mxu1 %v5532_v26 }
 0x399   : > { %5724 = vmatpush1.xpose.msra.mxu0 %v6678_v23  ;;  %5792 = vmatpush1.xpose.msra.mxu1 %v6688_v3 }
 0x39a   : > { %6692 = vmatprep.mubr.msk.f32.mxu1 %vm3931_vm9, %v5537_v18  ;;  %6691 = vmatprep.subr.msk.mxu1 %vm3931_vm9, %v6681_v21 }
 0x39b   : > { %5902 = vmatprep.subr.mxu0 %v6702_v46 }
 0x39c   : > { %5758 = vmatmul.mubr.f32.vlgmr.msra.gmra.mxu0 %v5534_v58 }
 0x39d   : > { %5794 = vmatpush1.xpose.msra.mxu1 %v6680_v56  ;;  %5903 = vmatpush1.xpose.msra.mxu0 %v6701_v10 }
 0x39e   : > { %5938 = vmatprep.mubr.f32.mxu0 %v5852_v24  ;;  %5904 = vmatprep.subr.mxu0 %v6694_v49 }
 0x39f   : > { %5972 = vmatprep.subr.mxu1 %v6704_v52 }
 0x3a0   : > { %5828 = vmatmul.mubr.f32.vlgmr.msra.gmra.mxu1 %v5536_v35 }
 0x3a1   : > { %5905 = vmatpush1.xpose.msra.mxu0 %v6693_v31  ;;  %5973 = vmatpush1.xpose.msra.mxu1 %v6703_v61 }
 0x3a2   : > { %6008 = vmatprep.mubr.f32.mxu1 %v5854_v6  ;;  %5974 = vmatprep.subr.mxu1 %v6696_v29 }
 0x3a3   : > { %6042 = vmatprep.subr.mxu0 %v6706_v37 }
 0x3a4   : > { %5939 = vmatmul.mubr.f32.vlgmr.msra.gmra.mxu0 %v5851_v36 }
 0x3a5   : > { %5975 = vmatpush1.xpose.msra.mxu1 %v6695_v27  ;;  %6043 = vmatpush1.xpose.msra.mxu0 %v6705_v17 }
 0x3a6   : > { %6078 = vmatprep.mubr.f32.mxu0 %v5856_v38  ;;  %6044 = vmatprep.subr.mxu0 %v6698_v54 }
 0x3a7   : > { %6709 = vmatprep.subr.msk.mxu1 %vm3931_vm9, %v6708_v44 }
 0x3a8   : > { %6009 = vmatmul.mubr.f32.vlgmr.msra.gmra.mxu1 %v5853_v62 }
 0x3a9   : > { %6045 = vmatpush1.xpose.msra.mxu0 %v6697_v1  ;;  %6113 = vmatpush1.xpose.msra.mxu1 %v6707_v11 }
 0x3aa   : > { %6711 = vmatprep.mubr.msk.f32.mxu1 %vm3931_vm9, %v5858_v30  ;;  %6710 = vmatprep.subr.msk.mxu1 %vm3931_vm9, %v6700_v16 }
 0x3ab   : > { %6223 = vmatprep.subr.mxu0 %v6721_v41 }
 0x3ac   : > { %6079 = vmatmul.mubr.f32.vlgmr.msra.gmra.mxu0 %v5855_v60 }
 0x3ad   : > { %6115 = vmatpush1.xpose.msra.mxu1 %v6699_v9  ;;  %6224 = vmatpush1.xpose.msra.mxu0 %v6720_v59 }
 0x3ae   : > { %6259 = vmatprep.mubr.f32.mxu0 %v6173_v51  ;;  %6225 = vmatprep.subr.mxu0 %v6713_v48 }
 0x3af   : > { %6293 = vmatprep.subr.mxu1 %v6723_v40 }
 0x3b0   : > { %6149 = vmatmul.mubr.f32.vlgmr.msra.gmra.mxu1 %v5857_v2 }
 0x3b1   : > { %6226 = vmatpush1.xpose.msra.mxu0 %v6712_v55  ;;  %6294 = vmatpush1.xpose.msra.mxu1 %v6722_v8 }
 0x3b2   : > { %6329 = vmatprep.mubr.f32.mxu1 %v6175_v25  ;;  %6295 = vmatprep.subr.mxu1 %v6715_v63 }
 0x3b3   : > { %6363 = vmatprep.subr.mxu0 %v6725_v43 }
 0x3b4   : > { %6260 = vmatmul.mubr.f32.vlgmr.msra.gmra.mxu0 %v6172_v20 }
 0x3b5   : > { %6296 = vmatpush1.xpose.msra.mxu1 %v6714_v13  ;;  %6364 = vmatpush1.xpose.msra.mxu0 %v6724_v42 }
 0x3b6   : > { %6399 = vmatprep.mubr.f32.mxu0 %v6177_v22  ;;  %6365 = vmatprep.subr.mxu0 %v6717_v15 }
 0x3b7   : > { %6728 = vmatprep.subr.msk.mxu1 %vm3931_vm9, %v6727_v7 }
 0x3b8   : > { %6330 = vmatmul.mubr.f32.vlgmr.msra.gmra.mxu1 %v6174_v5 }
 0x3b9   : > { %6366 = vmatpush1.xpose.msra.mxu0 %v6716_v45  ;;  %6434 = vmatpush1.xpose.msra.mxu1 %v6726_v12 }
 0x3ba   : > { %6730 = vmatprep.mubr.msk.f32.mxu1 %vm3931_vm9, %v6179_v14  ;;  %6729 = vmatprep.subr.msk.mxu1 %vm3931_vm9, %v6719_v33 }
 0x3bc   : > { %6400 = vmatmul.mubr.f32.vlgmr.msra.gmra.mxu0 %v6176_v0 }
 0x3bd   : > { %6436 = vmatpush1.xpose.msra.mxu1 %v6718_v32 }
 0x3c0   : > { %6470 = vmatmul.mubr.f32.vlgmr.msra.gmra.mxu1 %v6178_v47 }
 0x404   : > { %v4007_v34 = vpop.f32.mrf.mxu0 }
 0x406   : > { %v4009_v28 = vpop.f32.mrf.mxu0 }
 0x408   : > { %v4077_v50 = vpop.f32.mrf.mxu1 }
 0x409   : > { %v4078_v39 = vadd.f32 %v4077_v50, %v4007_v34 }
 0x40a   : > { %v4079_v4 = vpop.f32.mrf.mxu1 }
 0x40c   : > { %v4147_v19 = vpop.f32.mrf.mxu0 }
 0x40d   : > { %v4148_v26 = vadd.f32 %v4147_v19, %v4078_v39 }
 0x40e   : > { %v4149_v23 = vpop.f32.mrf.mxu0 }
 0x410   : > { %v4217_v53 = vpop.f32.mrf.mxu1 }
 0x411   : > { %v4218_v3 = vadd.f32 %v4217_v53, %v4148_v26 }
 0x412   : > { %v4219_v21 = vpop.f32.mrf.mxu1 }
 0x413   : > { %v4221_v31 = vadd.f32 %v4218_v3, %v3914_v57 }
 0x414   : > { %v4335_v18 = vpop.f32.mrf.mxu0 }
 0x416   : > { %v4337_v46 = vpop.f32.mrf.mxu0 }
 0x418   : > { %v4405_v58 = vpop.f32.mrf.mxu1 }
 0x419   : > { %v4406_v56 = vadd.f32 %v4405_v58, %v4335_v18 }
 0x41a   : > { %v4407_v10 = vpop.f32.mrf.mxu1 }
 0x41c   : > { %v4475_v49 = vpop.f32.mrf.mxu0 }
 0x41d   : > { %v4476_v24 = vadd.f32 %v4475_v49, %v4406_v56 }
 0x41e   : > { %v4477_v52 = vpop.f32.mrf.mxu0 }
 0x420   : > { %v4545_v35 = vpop.f32.mrf.mxu1 }
 0x421   : > { %v4546_v61 = vadd.f32 %v4545_v35, %v4476_v24 }
 0x422   : > { %v4547_v29 = vpop.f32.mrf.mxu1 }
 0x423   : > { %v4549_v6 = vadd.f32 %v4546_v61, %v4221_v31 }
 0x424   : > { %v4656_v37 = vpop.f32.mrf.mxu0 }
 0x426   : > { %v4658_v36 = vpop.f32.mrf.mxu0 }
 0x428   : > { %v4726_v27 = vpop.f32.mrf.mxu1 }
 0x429   : > { %v4727_v17 = vadd.f32 %v4726_v27, %v4656_v37 }
 0x42a   : > { %v4728_v54 = vpop.f32.mrf.mxu1 }
 0x42c   : > { %v4796_v38 = vpop.f32.mrf.mxu0 }
 0x42d   : > { %v4797_v44 = vadd.f32 %v4796_v38, %v4727_v17 }
 0x42e   : > { %v4798_v62 = vpop.f32.mrf.mxu0 }
 0x430   : > { %v4866_v1 = vpop.f32.mrf.mxu1 }
 0x431   : > { %v4867_v11 = vadd.f32 %v4866_v1, %v4797_v44 }
 0x432   : > { %v4868_v16 = vpop.f32.mrf.mxu1 }
 0x433   : > { %v4870_v30 = vadd.f32 %v4867_v11, %v4549_v6 }
 0x434   : > { %v4977_v41 = vpop.f32.mrf.mxu0 }
 0x436   : > { %v4979_v60 = vpop.f32.mrf.mxu0 }
 0x438   : > { %v5047_v9 = vpop.f32.mrf.mxu1 }
 0x439   : > { %v5048_v51 = vadd.f32 %v5047_v9, %v4977_v41 }
 0x43a   : > { %v5049_v59 = vpop.f32.mrf.mxu1 }
 0x43c   : > { %v5117_v48 = vpop.f32.mrf.mxu0 }
 0x43d   : > { %v5118_v2 = vadd.f32 %v5117_v48, %v5048_v51 }
 0x43e   : > { %v5119_v40 = vpop.f32.mrf.mxu0 }
 0x440   : > { %v5187_v55 = vpop.f32.mrf.mxu1 }
 0x441   : > { %v5188_v8 = vadd.f32 %v5187_v55, %v5118_v2 }
 0x442   : > { %v5189_v63 = vpop.f32.mrf.mxu1 }
 0x443   : > { %v5191_v25 = vadd.f32 %v5188_v8, %v4870_v30 }
 0x444   : > { %v5298_v43 = vpop.f32.mrf.mxu0 }
 0x446   : > { %v5300_v20 = vpop.f32.mrf.mxu0 }
 0x448   : > { %v5368_v13 = vpop.f32.mrf.mxu1 }
 0x449   : > { %v5369_v21 = vadd.f32 %v5368_v13, %v5298_v43 }
 0x44a   : > { %v5370_v42 = vpop.f32.mrf.mxu1 }
 0x44c   : > { %v5438_v15 = vpop.f32.mrf.mxu0 }
 0x44d   : > { %v5439_v46 = vadd.f32 %v5438_v15, %v5369_v21 }
 0x44e   : > { %v5440_v22 = vpop.f32.mrf.mxu0 }
 0x450   : > { %v5508_v7 = vpop.f32.mrf.mxu1 }
 0x451   : > { %v5509_v10 = vadd.f32 %v5508_v7, %v5439_v46 }
 0x452   : > { %v5510_v5 = vpop.f32.mrf.mxu1 }
 0x453   : > { %v5512_v61 = vadd.f32 %v5509_v10, %v5191_v25 }
 0x454   : > { %v5619_v45 = vpop.f32.mrf.mxu0 }
 0x456   : > { %v5621_v12 = vpop.f32.mrf.mxu0 }
 0x458   : > { %v5689_v33 = vpop.f32.mrf.mxu1 }
 0x459   : > { %v5690_v58 = vadd.f32 %v5689_v33, %v5619_v45 }
 0x45a   : > { %v5691_v14 = vpop.f32.mrf.mxu1 }
 0x45c   : > { %v5759_v0 = vpop.f32.mrf.mxu0 }
 0x45d   : > { %v5760_v49 = vadd.f32 %v5759_v0, %v5690_v58 }
 0x45e   : > { %v5761_v32 = vpop.f32.mrf.mxu0 }
 0x460   : > { %v5829_v47 = vpop.f32.mrf.mxu1 }
 0x461   : > { %v5830_v52 = vadd.f32 %v5829_v47, %v5760_v49 }
 0x462   : > { %v5831_v34 = vpop.f32.mrf.mxu1 }
 0x463   : > { %v5833_v36 = vadd.f32 %v5830_v52, %v5512_v61 }
 0x464   : > { %v5940_v28 = vpop.f32.mrf.mxu0 }
 0x466   : > { %v5942_v50 = vpop.f32.mrf.mxu0 }
 0x468   : > { %v6010_v39 = vpop.f32.mrf.mxu1 }
 0x469   : > { %v6011_v24 = vadd.f32 %v6010_v39, %v5940_v28 }
 0x46a   : > { %v6012_v4 = vpop.f32.mrf.mxu1 }
 0x46c   : > { %v6080_v19 = vpop.f32.mrf.mxu0 }
 0x46d   : > { %v6081_v35 = vadd.f32 %v6080_v19, %v6011_v24 }
 0x46e   : > { %v6082_v26 = vpop.f32.mrf.mxu0 }
 0x470   : > { %v6150_v23 = vpop.f32.mrf.mxu1 }
 0x471   : > { %v6151_v29 = vadd.f32 %v6150_v23, %v6081_v35 }
 0x472   : > { %v6152_v53 = vpop.f32.mrf.mxu1 }
 0x473   : > { %v6154_v54 = vadd.f32 %v6151_v29, %v5833_v36 }
 0x474   : > { %v6261_v3 = vpop.f32.mrf.mxu0 }
 0x476   : > { %v6263_v18 = vpop.f32.mrf.mxu0 }
 0x478   : > { %v6331_v56 = vpop.f32.mrf.mxu1 }
 0x479   : > { %v6332_v6 = vadd.f32 %v6331_v56, %v6261_v3 }
 0x47a   : > { %v6333_v57 = vpop.f32.mrf.mxu1 }
 0x47c   : > { %v6401_v31 = vpop.f32.mrf.mxu0 }
 0x47d   : > { %v6402_v27 = vadd.f32 %v6401_v31, %v6332_v6 }
 0x47e   : > { %v6403_v37 = vpop.f32.mrf.mxu0 }
 0x480   : > { %v6471_v17 = vpop.f32.mrf.mxu1 }
 0x481   : > { %v6472_v38 = vadd.f32 %v6471_v17, %v6402_v27 }
 0x482   : > { %v6473_v44 = vpop.f32.mrf.mxu1 }
 0x483   : > { %v6475_v62 = vadd.f32 %v6472_v38, %v6154_v54 }
 0x485   : > { %6477 = vst.msk [vmem:[%s295_s17] sm:$0x1] %vm6476_vm10, %v6475_v62 }
 0x486   : > { %6814 = shalt.err (!%p6811_p3)
}
 0x487   : > { %s6815_s26 = scalar_lea.hbm %s6489_s21, 16  ;;  %s6819_s13 = scalar_lea.hbm %s8536_s8, 32 }
 0x488   : > { %p6816_p4 = scmp.ne.s32.totalorder %s6489_s21, %s6815_s26  ;;  %p6820_p9 = scmp.lt.s32.totalorder %s6489_s21, %s8536_s8 }
 0x489   : > { %p6821_p10 = scmp.lt.s32.totalorder %s6819_s13, %s6815_s26 }
 0x48a   : > { %p6817_p7 = pnand %p6816_p4, %p6965_p5 }
 0x48b   : > { %p6822_p11 = por %p6821_p10, %p6820_p9 }
 0x48c   : > { %p6818_p8 = pneg %p6817_p7 }
 0x48e   : > { %p6823_p12 = pnand %p6822_p11, %p6818_p8 }
 0x490   : > { %6826 = shalt.err (!%p6823_p12)
}
 0x491   : > { %6734 = dma.vmem_to_hbm [thread:$0]  (%p6965_p5), %s6492_s18, 16, %s6489_s21, %s6479_s22  }
 0x492 PF: > { %p6740_p13 = scmp.ge.s32.totalorder %s6861_s30, 2  ;;  %s6503_s20 = sand.u32 1, %s6849_s27  }
 0x493   : > { %s6504_s23 = scalar_lea.sflag [#allocation4], %s6503_s20 }
 0x494   : > { %p6737_p0 = pnand %p6740_p13, %p6969_p6 }
 0x496   : > { %p6738_p1 = pneg %p6737_p0 }
 0x498   : > { %6844 = dma.done.wait (%p6738_p1), %s6504_s23, 16  }
 0x499   : > { %6846 = vsyncadd (%p6738_p1), %s6504_s23, 4294967280  ;;  %p18_p2 = scmp.ge.s32.totalorder %s6952_s11, 4   ;;  %s8587_s27 = smov %s6853_s28 }
 0x49a   : > { %s8588_s28 = smov %s6857_s29  ;;  %s8589_s29 = smov %s6963_s14 }
 0x49b   : > { %s8590_s30 = smov %s6952_s11  ;;  %20 = sbr.rel (!%p18_p2) target bundleno = 3 (0x3), region = 102 }
 0x4a0   :  { %6508 = vsyncpa [#allocation4], 1 }
 0x4a1   :  { %6510 = vsyncpa [#allocation4 + $0x1], 1 }

</bundles_post_ra>
